<compile_context>
chip_gen: v7x
topology: tpu7x:2x2x1
jax: 0.10.0
libtpu: 0.0.40
codegen_flags: <defaults>
</compile_context>

<pallas_src>
import functools
import numpy as np
import jax
import jax.numpy as jnp
from jax.experimental import pallas as pl
from jax.experimental.pallas import tpu as pltpu

# ---------------- config (small, consistent with the module) ----------------
B = 2            # batch
S = 8            # seq len (num_tokens)
EMB = 64         # emb_dim
NH = 4           # n_heads
NKV = 2          # n_kv_groups
HID = 128        # hidden_dim (FFN)
HD = EMB // NH   # head_dim = 16
GS = NH // NKV   # group_size
EPS = 1e-5


# ------------------------------- kernel -------------------------------------
def transformer_block_kernel(x_ref, bias_ref, cos_ref, sin_ref,
                             wqkv_ref, wo_ref, wgu_ref, fc3_ref,
                             n1_ref, n2_ref, o_ref,
                             *, batch_block, seq, num_heads, num_kv_groups,
                             head_dim, emb, kvd, hidden, eps):
    group_size = num_heads // num_kv_groups
    rope_w = emb + kvd                      # q|k columns that get RoPE
    rows = batch_block * seq

    x = x_ref[...]                          # (rows, E) f32

    # ---- RMSNorm 1 (f32 elementwise) ----
    h = x * jax.lax.rsqrt(jnp.mean(x * x, axis=-1, keepdims=True) + eps)
    h = h * n1_ref[...]                     # (1, E) broadcasts

    # ---- fused projection: [q | k | v | rot(q) | rot(k)] (bf16 MXU, f32 acc) ----
    # 1/sqrt(head_dim) is folded into the q / rot(q) columns (exact: 0.25).
    proj = jnp.dot(h.astype(jnp.bfloat16), wqkv_ref[...],
                   preferred_element_type=jnp.float32)      # (rows, 2E+3KVD)

    qk = proj[:, :rope_w]                   # (rows, E+KVD)
    v_all = proj[:, rope_w:rope_w + kvd]    # (rows, KVD)
    rqk = proj[:, rope_w + kvd:]            # (rows, E+KVD) = rotate_half(q|k)
    # RoPE: rotate_half already produced by the matmul -> one mul-add.
    qk = qk * cos_ref[...] + rqk * sin_ref[...]

    wo = wo_ref[...]                        # (E, E) bf16
    bias = bias_ref[...]                    # (GS*S, S) additive mask (0 / -1e30)

    outs = []
    for bi in range(batch_block):           # per-batch attention (static unroll)
        r0 = bi * seq
        qk_b = qk[r0:r0 + seq, :]           # (S, E+KVD)
        v_b = v_all[r0:r0 + seq, :]         # (S, KVD)
        acc = jnp.zeros((seq, emb), jnp.float32)
        for g in range(num_kv_groups):      # static unroll over kv groups
            # stack the group's GS heads along sublanes: (GS*S, HD)
            q_stack = jnp.concatenate(
                [qk_b[:, (g * group_size + xh) * head_dim:
                         (g * group_size + xh + 1) * head_dim]
                 for xh in range(group_size)], axis=0).astype(jnp.bfloat16)
            k_g = qk_b[:, emb + g * head_dim:
                          emb + (g + 1) * head_dim].astype(jnp.bfloat16)   # (S, HD)
            v_g = v_b[:, g * head_dim:(g + 1) * head_dim].astype(jnp.bfloat16)
            # one score matmul per group; contract last dims (no K^T materialized)
            sc = jax.lax.dot_general(q_stack, k_g,
                                     (((1,), (1,)), ((), ())),
                                     preferred_element_type=jnp.float32)   # (GS*S, S)
            sc = sc + bias
            m = jnp.max(sc, axis=-1, keepdims=True)
            p = jnp.exp(sc - m)
            l = jnp.sum(p, axis=-1, keepdims=True)
            ctx = jnp.dot(p.astype(jnp.bfloat16), v_g,
                          preferred_element_type=jnp.float32)              # (GS*S, HD)
            ctx = (ctx * pl.reciprocal(l, approx=True)).astype(jnp.bfloat16)
            # fold the head concat into the output projection (Wo sublane slices)
            for xh in range(group_size):
                hi = g * group_size + xh
                acc = acc + jnp.dot(
                    ctx[xh * seq:(xh + 1) * seq, :],
                    wo[hi * head_dim:(hi + 1) * head_dim, :],
                    preferred_element_type=jnp.float32)
        outs.append(acc)
    attn = outs[0] if batch_block == 1 else jnp.concatenate(outs, axis=0)

    x1 = x + attn                           # residual 1

    # ---- feed-forward branch (SwiGLU) ----
    h2 = x1 * jax.lax.rsqrt(jnp.mean(x1 * x1, axis=-1, keepdims=True) + eps)
    h2 = (h2 * n2_ref[...]).astype(jnp.bfloat16)
    gu = jnp.dot(h2, wgu_ref[...], preferred_element_type=jnp.float32)  # (rows, 2*HID)
    g1 = gu[:, :hidden]
    g2 = gu[:, hidden:]
    act = (g1 * jax.nn.sigmoid(g1) * g2).astype(jnp.bfloat16)           # silu(fc1)*fc2
    ff = jnp.dot(act, fc3_ref[...], preferred_element_type=jnp.float32)

    o_ref[...] = x1 + ff                    # residual 2


# ------------------------------- wrapper -------------------------------------
def _rotate_half_cols(w, head_dim):
    """Permute/negate weight columns so x @ w_rot == rotate_half(x @ w) per head."""
    half = head_dim // 2
    blocks = []
    for hb in range(w.shape[1] // head_dim):
        blk = w[:, hb * head_dim:(hb + 1) * head_dim]
        blocks.append(jnp.concatenate([-blk[:, half:], blk[:, :half]], axis=1))
    return jnp.concatenate(blocks, axis=1)


def _tensorcores_per_chip():
    try:
        kind = jax.devices()[0].device_kind.lower()
        if "7" in kind:          # v7x-class chips: 2 TensorCores per chip
            return 2
    except Exception:
        pass
    return 1                     # v5e / v6e (and safe default)


def transformer_block(x, mask_bool, cos, sin, params):
    b, s, e = x.shape
    nh, nkv = NH, NKV
    hd = e // nh
    gs = nh // nkv
    kvd = nkv * hd
    hid = params["fc1"].shape[1]
    rope_w = e + kvd
    scale = jnp.float32(1.0 / float(np.sqrt(hd)))          # 0.25 (exact)

    # batch-block: collapse batch on single-TC chips, 1 elem/step on multi-TC.
    bb = 1 if _tensorcores_per_chip() >= 2 else b
    bb = max(1, min(bb, b))
    grid = (b // bb,)

    # ---- pack weights (bf16, lane-dense fused matmuls) ----
    wq_s = params["wq"] * scale
    wqkv = jnp.concatenate(
        [wq_s, params["wk"], params["wv"],
         _rotate_half_cols(wq_s, hd), _rotate_half_cols(params["wk"], hd)],
        axis=1).astype(jnp.bfloat16)                        # (E, 2E + 3*KVD)
    wo = params["wo"].astype(jnp.bfloat16)
    wgu = jnp.concatenate([params["fc1"], params["fc2"]],
                          axis=1).astype(jnp.bfloat16)      # (E, 2*HID)
    fc3 = params["fc3"].astype(jnp.bfloat16)

    # cos/sin tiled across all q heads + k groups, and across the batch block.
    cos_full = jnp.tile(cos, (bb, rope_w // hd))            # (bb*S, E+KVD)
    sin_full = jnp.tile(sin, (bb, rope_w // hd))

    # additive causal mask (0 / -1e30), tiled GS x along sublanes for the
    # group-stacked score slab.
    bias = jnp.where(mask_bool[:s, :s], jnp.float32(-1e30), jnp.float32(0.0))
    bias_stack = jnp.tile(bias, (gs, 1))                    # (GS*S, S)

    # flatten batch into rows so the kernel works on a (rows, E) slab directly.
    x_flat = x.reshape(b * s, e)

    kernel = functools.partial(
        transformer_block_kernel,
        batch_block=bb, seq=s, num_heads=nh, num_kv_groups=nkv,
        head_dim=hd, emb=e, kvd=kvd, hidden=hid, eps=EPS)

    def full_spec(shape):
        n = len(shape)
        return pl.BlockSpec(shape, lambda i, _n=n: (0,) * _n)

    grid_spec = pltpu.PrefetchScalarGridSpec(
        num_scalar_prefetch=0,
        grid=grid,
        in_specs=[
            pl.BlockSpec((bb * s, e), lambda i: (i, 0)),    # x rows slab
            full_spec((gs * s, s)),                         # stacked additive mask
            full_spec((bb * s, rope_w)),                    # cos (tiled)
            full_spec((bb * s, rope_w)),                    # sin (tiled)
            full_spec((e, wqkv.shape[1])),                  # fused qkv+rot weights
            full_spec((e, e)),                              # Wo
            full_spec((e, 2 * hid)),                        # fc1|fc2 fused
            full_spec((hid, e)),                            # fc3
            full_spec((1, e)),                              # norm1 weight
            full_spec((1, e)),                              # norm2 weight
        ],
        out_specs=pl.BlockSpec((bb * s, e), lambda i: (i, 0)),
    )

    out_flat = pl.pallas_call(
        kernel,
        out_shape=jax.ShapeDtypeStruct((b * s, e), jnp.float32),
        grid_spec=grid_spec,
        compiler_params=pltpu.CompilerParams(
            dimension_semantics=("parallel",)),             # 1 elem/TC on v7x
    )(x_flat, bias_stack, cos_full, sin_full, wqkv, wo, wgu, fc3,
      params["n1"], params["n2"])
    return out_flat.reshape(b, s, e)


# --------------------------- pure-JAX reference -------------------------------
def ref_transformer_block(x, mask_bool, cos, sin, p):
    def rms(t, w):
        return t * jax.lax.rsqrt(jnp.mean(t * t, -1, keepdims=True) + EPS) * w

    def rope(t):  # (B, H, S, D)
        d = t.shape[-1]
        t1, t2 = t[..., : d // 2], t[..., d // 2:]
        rot = jnp.concatenate([-t2, t1], -1)
        return t * cos[None, None] + rot * sin[None, None]

    b, s, e = x.shape
    h = rms(x, p["n1"][0])
    q = (h @ p["wq"]).reshape(b, s, NH, HD).transpose(0, 2, 1, 3)
    k = (h @ p["wk"]).reshape(b, s, NKV, HD).transpose(0, 2, 1, 3)
    v = (h @ p["wv"]).reshape(b, s, NKV, HD).transpose(0, 2, 1, 3)
    q, k = rope(q), rope(k)
    k = jnp.repeat(k, GS, axis=1)
    v = jnp.repeat(v, GS, axis=1)
    sc = jnp.einsum("bhqd,bhkd->bhqk", q, k)
    sc = jnp.where(mask_bool[None, None], -jnp.inf, sc)
    a = jax.nn.softmax(sc / jnp.sqrt(jnp.float32(HD)), axis=-1)
    ctx = jnp.einsum("bhqk,bhkd->bhqd", a, v).transpose(0, 2, 1, 3).reshape(b, s, e)
    x1 = x + ctx @ p["wo"]
    h2 = rms(x1, p["n2"][0])
    ff = (jax.nn.silu(h2 @ p["fc1"]) * (h2 @ p["fc2"])) @ p["fc3"]
    return x1 + ff


# --------------------------------- main ---------------------------------------
if __name__ == "__main__":
    key = jax.random.PRNGKey(0)
    ks = jax.random.split(key, 9)

    x = jax.random.normal(ks[0], (B, S, EMB), jnp.float32)

    init = lambda k, shape: 0.05 * jax.random.normal(k, shape, jnp.float32)
    params = {
        "wq": init(ks[1], (EMB, EMB)),            # (in, out) = W_query.weight.T
        "wk": init(ks[2], (EMB, NKV * HD)),
        "wv": init(ks[3], (EMB, NKV * HD)),
        "wo": init(ks[4], (EMB, EMB)),
        "fc1": init(ks[5], (EMB, HID)),
        "fc2": init(ks[6], (EMB, HID)),
        "fc3": init(ks[7], (HID, EMB)),
        "n1": jnp.ones((1, EMB), jnp.float32),    # nn.RMSNorm default weight
        "n2": jnp.ones((1, EMB), jnp.float32),
    }

    # RoPE tables: (S, HD) with [cos(theta), cos(theta)] layout (half-split RoPE)
    inv_freq = 1.0 / (10000.0 ** (jnp.arange(0, HD, 2, dtype=jnp.float32) / HD))
    angles = jnp.arange(S, dtype=jnp.float32)[:, None] * inv_freq[None, :]
    cos = jnp.concatenate([jnp.cos(angles), jnp.cos(angles)], axis=-1)
    sin = jnp.concatenate([jnp.sin(angles), jnp.sin(angles)], axis=-1)

    # causal mask: True above diagonal (masked_fill positions)
    mask_bool = jnp.triu(jnp.ones((S, S), dtype=bool), k=1)

    out = transformer_block(x, mask_bool, cos, sin, params)
    out = jax.block_until_ready(out)

    ref = jax.block_until_ready(ref_transformer_block(x, mask_bool, cos, sin, params))
    # bf16 matmul operands + approx reciprocal -> looser tolerance vs f32 reference
    np.testing.assert_allclose(np.asarray(out), np.asarray(ref), rtol=2e-2, atol=2e-2)

    print("KERNEL_OK")
</pallas_src>

<mosaic_0001>
module attributes {stable_mosaic.version = 11 : i64} {
  func.func @transformer_block_kernel(%arg0: i32, %arg1: memref<16x64xf32, #tpu.memory_space<vmem>>, %arg2: memref<16x8xf32, #tpu.memory_space<vmem>>, %arg3: memref<16x96xf32, #tpu.memory_space<vmem>>, %arg4: memref<16x96xf32, #tpu.memory_space<vmem>>, %arg5: memref<64x224xbf16, #tpu.memory_space<vmem>>, %arg6: memref<64x64xbf16, #tpu.memory_space<vmem>>, %arg7: memref<64x256xbf16, #tpu.memory_space<vmem>>, %arg8: memref<128x64xbf16, #tpu.memory_space<vmem>>, %arg9: memref<1x64xf32, #tpu.memory_space<vmem>>, %arg10: memref<1x64xf32, #tpu.memory_space<vmem>>, %arg11: memref<16x64xf32, #tpu.memory_space<vmem>>) attributes {dimension_semantics = [#tpu.dimension_semantics<parallel>], iteration_bounds = array<i64: 1>, scalar_prefetch = 0 : i64, scratch_operands = 0 : i64, tpu.core_type = #tpu.core_type<tc>, window_params = [{transform_indices = @transform_0, window_bounds = array<i64: 16, 64>}, {pipeline_mode = #tpu.pipeline_mode<synchronous>, transform_indices = @transform_1, window_bounds = array<i64: 16, 8>}, {pipeline_mode = #tpu.pipeline_mode<synchronous>, transform_indices = @transform_2, window_bounds = array<i64: 16, 96>}, {pipeline_mode = #tpu.pipeline_mode<synchronous>, transform_indices = @transform_3, window_bounds = array<i64: 16, 96>}, {pipeline_mode = #tpu.pipeline_mode<synchronous>, transform_indices = @transform_4, window_bounds = array<i64: 64, 224>}, {pipeline_mode = #tpu.pipeline_mode<synchronous>, transform_indices = @transform_5, window_bounds = array<i64: 64, 64>}, {pipeline_mode = #tpu.pipeline_mode<synchronous>, transform_indices = @transform_6, window_bounds = array<i64: 64, 256>}, {pipeline_mode = #tpu.pipeline_mode<synchronous>, transform_indices = @transform_7, window_bounds = array<i64: 128, 64>}, {pipeline_mode = #tpu.pipeline_mode<synchronous>, transform_indices = @transform_8, window_bounds = array<i64: 1, 64>}, {pipeline_mode = #tpu.pipeline_mode<synchronous>, transform_indices = @transform_9, window_bounds = array<i64: 1, 64>}, {transform_indices = @transform_10, window_bounds = array<i64: 16, 64>}]} {
    %c0 = arith.constant 0 : index
    %c0_0 = arith.constant 0 : index
    %0 = vector.load %arg1[%c0, %c0_0] : memref<16x64xf32, #tpu.memory_space<vmem>>, vector<16x64xf32>
    %1 = arith.mulf %0, %0 : vector<16x64xf32>
    %cst = arith.constant dense<0.000000e+00> : vector<16xf32>
    %2 = vector.multi_reduction <add>, %1, %cst [1] : vector<16x64xf32> to vector<16xf32>
    %3 = vector.shape_cast %2 : vector<16xf32> to vector<16x1xf32>
    %cst_1 = arith.constant 6.400000e+01 : f32
    %4 = vector.broadcast %cst_1 : f32 to vector<16x1xf32>
    %5 = arith.divf %3, %4 : vector<16x1xf32>
    %cst_2 = arith.constant 9.99999974E-6 : f32
    %6 = vector.broadcast %cst_2 : f32 to vector<16x1xf32>
    %7 = arith.addf %5, %6 : vector<16x1xf32>
    %8 = math.rsqrt %7 : vector<16x1xf32>
    %9 = vector.broadcast %8 : vector<16x1xf32> to vector<16x64xf32>
    %10 = arith.mulf %0, %9 : vector<16x64xf32>
    %c0_3 = arith.constant 0 : index
    %c0_4 = arith.constant 0 : index
    %11 = vector.load %arg9[%c0_3, %c0_4] : memref<1x64xf32, #tpu.memory_space<vmem>>, vector<1x64xf32>
    %12 = vector.broadcast %11 : vector<1x64xf32> to vector<16x64xf32>
    %13 = arith.mulf %10, %12 : vector<16x64xf32>
    %14 = arith.truncf %13 : vector<16x64xf32> to vector<16x64xbf16>
    %c0_5 = arith.constant 0 : index
    %c0_6 = arith.constant 0 : index
    %15 = vector.load %arg5[%c0_5, %c0_6] : memref<64x224xbf16, #tpu.memory_space<vmem>>, vector<64x224xbf16>
    %cst_7 = arith.constant dense<0.000000e+00> : vector<16x224xf32>
    %16 = tpu.matmul %14, %15, %cst_7 {dimension_numbers = #tpu.dot_dimension_numbers<[1], [0], [0], [1], [0, 0, 1, 1], [], []>} : vector<16x64xbf16>, vector<64x224xbf16>, vector<16x224xf32> -> vector<16x224xf32>
    %17 = vector.extract_strided_slice %16 {offsets = [0, 0], sizes = [16, 96], strides = [1, 1]} : vector<16x224xf32> to vector<16x96xf32>
    %18 = vector.extract_strided_slice %16 {offsets = [0, 96], sizes = [16, 32], strides = [1, 1]} : vector<16x224xf32> to vector<16x32xf32>
    %19 = vector.extract_strided_slice %16 {offsets = [0, 128], sizes = [16, 96], strides = [1, 1]} : vector<16x224xf32> to vector<16x96xf32>
    %c0_8 = arith.constant 0 : index
    %c0_9 = arith.constant 0 : index
    %20 = vector.load %arg3[%c0_8, %c0_9] : memref<16x96xf32, #tpu.memory_space<vmem>>, vector<16x96xf32>
    %21 = arith.mulf %17, %20 : vector<16x96xf32>
    %c0_10 = arith.constant 0 : index
    %c0_11 = arith.constant 0 : index
    %22 = vector.load %arg4[%c0_10, %c0_11] : memref<16x96xf32, #tpu.memory_space<vmem>>, vector<16x96xf32>
    %23 = arith.mulf %19, %22 : vector<16x96xf32>
    %24 = arith.addf %21, %23 : vector<16x96xf32>
    %c0_12 = arith.constant 0 : index
    %c0_13 = arith.constant 0 : index
    %25 = vector.load %arg6[%c0_12, %c0_13] : memref<64x64xbf16, #tpu.memory_space<vmem>>, vector<64x64xbf16>
    %c0_14 = arith.constant 0 : index
    %c0_15 = arith.constant 0 : index
    %26 = vector.load %arg2[%c0_14, %c0_15] : memref<16x8xf32, #tpu.memory_space<vmem>>, vector<16x8xf32>
    %27 = vector.extract_strided_slice %24 {offsets = [0, 0], sizes = [8, 96], strides = [1, 1]} : vector<16x96xf32> to vector<8x96xf32>
    %28 = vector.extract_strided_slice %18 {offsets = [0, 0], sizes = [8, 32], strides = [1, 1]} : vector<16x32xf32> to vector<8x32xf32>
    %cst_16 = arith.constant 0.000000e+00 : f32
    %29 = vector.broadcast %cst_16 : f32 to vector<8x64xf32>
    %30 = vector.extract_strided_slice %27 {offsets = [0, 0], sizes = [8, 16], strides = [1, 1]} : vector<8x96xf32> to vector<8x16xf32>
    %31 = vector.extract_strided_slice %27 {offsets = [0, 16], sizes = [8, 16], strides = [1, 1]} : vector<8x96xf32> to vector<8x16xf32>
    %32 = tpu.concatenate %30, %31 in 0 : vector<8x16xf32>, vector<8x16xf32> -> vector<16x16xf32>
    %33 = arith.truncf %32 : vector<16x16xf32> to vector<16x16xbf16>
    %34 = vector.extract_strided_slice %27 {offsets = [0, 64], sizes = [8, 16], strides = [1, 1]} : vector<8x96xf32> to vector<8x16xf32>
    %35 = arith.truncf %34 : vector<8x16xf32> to vector<8x16xbf16>
    %36 = vector.extract_strided_slice %28 {offsets = [0, 0], sizes = [8, 16], strides = [1, 1]} : vector<8x32xf32> to vector<8x16xf32>
    %37 = arith.truncf %36 : vector<8x16xf32> to vector<8x16xbf16>
    %cst_17 = arith.constant dense<0.000000e+00> : vector<16x8xf32>
    %38 = tpu.matmul %33, %35, %cst_17 {dimension_numbers = #tpu.dot_dimension_numbers<[1], [1], [0], [0], [0, 0, 1, 0], [], []>} : vector<16x16xbf16>, vector<8x16xbf16>, vector<16x8xf32> -> vector<16x8xf32>
    %39 = arith.addf %38, %26 : vector<16x8xf32>
    %cst_18 = arith.constant dense<0xFF800000> : vector<16xf32>
    %40 = vector.multi_reduction <maximumf>, %39, %cst_18 [1] : vector<16x8xf32> to vector<16xf32>
    %41 = vector.shape_cast %40 : vector<16xf32> to vector<16x1xf32>
    %42 = vector.broadcast %41 : vector<16x1xf32> to vector<16x8xf32>
    %43 = arith.subf %39, %42 : vector<16x8xf32>
    %44 = math.exp %43 : vector<16x8xf32>
    %cst_19 = arith.constant dense<0.000000e+00> : vector<16xf32>
    %45 = vector.multi_reduction <add>, %44, %cst_19 [1] : vector<16x8xf32> to vector<16xf32>
    %46 = vector.shape_cast %45 : vector<16xf32> to vector<16x1xf32>
    %47 = arith.truncf %44 : vector<16x8xf32> to vector<16x8xbf16>
    %cst_20 = arith.constant dense<0.000000e+00> : vector<16x16xf32>
    %48 = tpu.matmul %47, %37, %cst_20 {dimension_numbers = #tpu.dot_dimension_numbers<[1], [0], [0], [1], [0, 0, 1, 1], [], []>} : vector<16x8xbf16>, vector<8x16xbf16>, vector<16x16xf32> -> vector<16x16xf32>
    %49 = tpu.reciprocal %46 {approx = true} : vector<16x1xf32> -> vector<16x1xf32>
    %50 = vector.broadcast %49 : vector<16x1xf32> to vector<16x16xf32>
    %51 = arith.mulf %48, %50 : vector<16x16xf32>
    %52 = arith.truncf %51 : vector<16x16xf32> to vector<16x16xbf16>
    %53 = vector.extract_strided_slice %52 {offsets = [0, 0], sizes = [8, 16], strides = [1, 1]} : vector<16x16xbf16> to vector<8x16xbf16>
    %54 = vector.extract_strided_slice %25 {offsets = [0, 0], sizes = [16, 64], strides = [1, 1]} : vector<64x64xbf16> to vector<16x64xbf16>
    %cst_21 = arith.constant dense<0.000000e+00> : vector<8x64xf32>
    %55 = tpu.matmul %53, %54, %cst_21 {dimension_numbers = #tpu.dot_dimension_numbers<[1], [0], [0], [1], [0, 0, 1, 1], [], []>} : vector<8x16xbf16>, vector<16x64xbf16>, vector<8x64xf32> -> vector<8x64xf32>
    %56 = arith.addf %29, %55 : vector<8x64xf32>
    %57 = vector.extract_strided_slice %52 {offsets = [8, 0], sizes = [8, 16], strides = [1, 1]} : vector<16x16xbf16> to vector<8x16xbf16>
    %58 = vector.extract_strided_slice %25 {offsets = [16, 0], sizes = [16, 64], strides = [1, 1]} : vector<64x64xbf16> to vector<16x64xbf16>
    %cst_22 = arith.constant dense<0.000000e+00> : vector<8x64xf32>
    %59 = tpu.matmul %57, %58, %cst_22 {dimension_numbers = #tpu.dot_dimension_numbers<[1], [0], [0], [1], [0, 0, 1, 1], [], []>} : vector<8x16xbf16>, vector<16x64xbf16>, vector<8x64xf32> -> vector<8x64xf32>
    %60 = arith.addf %56, %59 : vector<8x64xf32>
    %61 = vector.extract_strided_slice %27 {offsets = [0, 32], sizes = [8, 16], strides = [1, 1]} : vector<8x96xf32> to vector<8x16xf32>
    %62 = vector.extract_strided_slice %27 {offsets = [0, 48], sizes = [8, 16], strides = [1, 1]} : vector<8x96xf32> to vector<8x16xf32>
    %63 = tpu.concatenate %61, %62 in 0 : vector<8x16xf32>, vector<8x16xf32> -> vector<16x16xf32>
    %64 = arith.truncf %63 : vector<16x16xf32> to vector<16x16xbf16>
    %65 = vector.extract_strided_slice %27 {offsets = [0, 80], sizes = [8, 16], strides = [1, 1]} : vector<8x96xf32> to vector<8x16xf32>
    %66 = arith.truncf %65 : vector<8x16xf32> to vector<8x16xbf16>
    %67 = vector.extract_strided_slice %28 {offsets = [0, 16], sizes = [8, 16], strides = [1, 1]} : vector<8x32xf32> to vector<8x16xf32>
    %68 = arith.truncf %67 : vector<8x16xf32> to vector<8x16xbf16>
    %cst_23 = arith.constant dense<0.000000e+00> : vector<16x8xf32>
    %69 = tpu.matmul %64, %66, %cst_23 {dimension_numbers = #tpu.dot_dimension_numbers<[1], [1], [0], [0], [0, 0, 1, 0], [], []>} : vector<16x16xbf16>, vector<8x16xbf16>, vector<16x8xf32> -> vector<16x8xf32>
    %70 = arith.addf %69, %26 : vector<16x8xf32>
    %cst_24 = arith.constant dense<0xFF800000> : vector<16xf32>
    %71 = vector.multi_reduction <maximumf>, %70, %cst_24 [1] : vector<16x8xf32> to vector<16xf32>
    %72 = vector.shape_cast %71 : vector<16xf32> to vector<16x1xf32>
    %73 = vector.broadcast %72 : vector<16x1xf32> to vector<16x8xf32>
    %74 = arith.subf %70, %73 : vector<16x8xf32>
    %75 = math.exp %74 : vector<16x8xf32>
    %cst_25 = arith.constant dense<0.000000e+00> : vector<16xf32>
    %76 = vector.multi_reduction <add>, %75, %cst_25 [1] : vector<16x8xf32> to vector<16xf32>
    %77 = vector.shape_cast %76 : vector<16xf32> to vector<16x1xf32>
    %78 = arith.truncf %75 : vector<16x8xf32> to vector<16x8xbf16>
    %cst_26 = arith.constant dense<0.000000e+00> : vector<16x16xf32>
    %79 = tpu.matmul %78, %68, %cst_26 {dimension_numbers = #tpu.dot_dimension_numbers<[1], [0], [0], [1], [0, 0, 1, 1], [], []>} : vector<16x8xbf16>, vector<8x16xbf16>, vector<16x16xf32> -> vector<16x16xf32>
    %80 = tpu.reciprocal %77 {approx = true} : vector<16x1xf32> -> vector<16x1xf32>
    %81 = vector.broadcast %80 : vector<16x1xf32> to vector<16x16xf32>
    %82 = arith.mulf %79, %81 : vector<16x16xf32>
    %83 = arith.truncf %82 : vector<16x16xf32> to vector<16x16xbf16>
    %84 = vector.extract_strided_slice %83 {offsets = [0, 0], sizes = [8, 16], strides = [1, 1]} : vector<16x16xbf16> to vector<8x16xbf16>
    %85 = vector.extract_strided_slice %25 {offsets = [32, 0], sizes = [16, 64], strides = [1, 1]} : vector<64x64xbf16> to vector<16x64xbf16>
    %cst_27 = arith.constant dense<0.000000e+00> : vector<8x64xf32>
    %86 = tpu.matmul %84, %85, %cst_27 {dimension_numbers = #tpu.dot_dimension_numbers<[1], [0], [0], [1], [0, 0, 1, 1], [], []>} : vector<8x16xbf16>, vector<16x64xbf16>, vector<8x64xf32> -> vector<8x64xf32>
    %87 = arith.addf %60, %86 : vector<8x64xf32>
    %88 = vector.extract_strided_slice %83 {offsets = [8, 0], sizes = [8, 16], strides = [1, 1]} : vector<16x16xbf16> to vector<8x16xbf16>
    %89 = vector.extract_strided_slice %25 {offsets = [48, 0], sizes = [16, 64], strides = [1, 1]} : vector<64x64xbf16> to vector<16x64xbf16>
    %cst_28 = arith.constant dense<0.000000e+00> : vector<8x64xf32>
    %90 = tpu.matmul %88, %89, %cst_28 {dimension_numbers = #tpu.dot_dimension_numbers<[1], [0], [0], [1], [0, 0, 1, 1], [], []>} : vector<8x16xbf16>, vector<16x64xbf16>, vector<8x64xf32> -> vector<8x64xf32>
    %91 = arith.addf %87, %90 : vector<8x64xf32>
    %92 = vector.extract_strided_slice %24 {offsets = [8, 0], sizes = [8, 96], strides = [1, 1]} : vector<16x96xf32> to vector<8x96xf32>
    %93 = vector.extract_strided_slice %18 {offsets = [8, 0], sizes = [8, 32], strides = [1, 1]} : vector<16x32xf32> to vector<8x32xf32>
    %cst_29 = arith.constant 0.000000e+00 : f32
    %94 = vector.broadcast %cst_29 : f32 to vector<8x64xf32>
    %95 = vector.extract_strided_slice %92 {offsets = [0, 0], sizes = [8, 16], strides = [1, 1]} : vector<8x96xf32> to vector<8x16xf32>
    %96 = vector.extract_strided_slice %92 {offsets = [0, 16], sizes = [8, 16], strides = [1, 1]} : vector<8x96xf32> to vector<8x16xf32>
    %97 = tpu.concatenate %95, %96 in 0 : vector<8x16xf32>, vector<8x16xf32> -> vector<16x16xf32>
    %98 = arith.truncf %97 : vector<16x16xf32> to vector<16x16xbf16>
    %99 = vector.extract_strided_slice %92 {offsets = [0, 64], sizes = [8, 16], strides = [1, 1]} : vector<8x96xf32> to vector<8x16xf32>
    %100 = arith.truncf %99 : vector<8x16xf32> to vector<8x16xbf16>
    %101 = vector.extract_strided_slice %93 {offsets = [0, 0], sizes = [8, 16], strides = [1, 1]} : vector<8x32xf32> to vector<8x16xf32>
    %102 = arith.truncf %101 : vector<8x16xf32> to vector<8x16xbf16>
    %cst_30 = arith.constant dense<0.000000e+00> : vector<16x8xf32>
    %103 = tpu.matmul %98, %100, %cst_30 {dimension_numbers = #tpu.dot_dimension_numbers<[1], [1], [0], [0], [0, 0, 1, 0], [], []>} : vector<16x16xbf16>, vector<8x16xbf16>, vector<16x8xf32> -> vector<16x8xf32>
    %104 = arith.addf %103, %26 : vector<16x8xf32>
    %cst_31 = arith.constant dense<0xFF800000> : vector<16xf32>
    %105 = vector.multi_reduction <maximumf>, %104, %cst_31 [1] : vector<16x8xf32> to vector<16xf32>
    %106 = vector.shape_cast %105 : vector<16xf32> to vector<16x1xf32>
    %107 = vector.broadcast %106 : vector<16x1xf32> to vector<16x8xf32>
    %108 = arith.subf %104, %107 : vector<16x8xf32>
    %109 = math.exp %108 : vector<16x8xf32>
    %cst_32 = arith.constant dense<0.000000e+00> : vector<16xf32>
    %110 = vector.multi_reduction <add>, %109, %cst_32 [1] : vector<16x8xf32> to vector<16xf32>
    %111 = vector.shape_cast %110 : vector<16xf32> to vector<16x1xf32>
    %112 = arith.truncf %109 : vector<16x8xf32> to vector<16x8xbf16>
    %cst_33 = arith.constant dense<0.000000e+00> : vector<16x16xf32>
    %113 = tpu.matmul %112, %102, %cst_33 {dimension_numbers = #tpu.dot_dimension_numbers<[1], [0], [0], [1], [0, 0, 1, 1], [], []>} : vector<16x8xbf16>, vector<8x16xbf16>, vector<16x16xf32> -> vector<16x16xf32>
    %114 = tpu.reciprocal %111 {approx = true} : vector<16x1xf32> -> vector<16x1xf32>
    %115 = vector.broadcast %114 : vector<16x1xf32> to vector<16x16xf32>
    %116 = arith.mulf %113, %115 : vector<16x16xf32>
    %117 = arith.truncf %116 : vector<16x16xf32> to vector<16x16xbf16>
    %118 = vector.extract_strided_slice %117 {offsets = [0, 0], sizes = [8, 16], strides = [1, 1]} : vector<16x16xbf16> to vector<8x16xbf16>
    %119 = vector.extract_strided_slice %25 {offsets = [0, 0], sizes = [16, 64], strides = [1, 1]} : vector<64x64xbf16> to vector<16x64xbf16>
    %cst_34 = arith.constant dense<0.000000e+00> : vector<8x64xf32>
    %120 = tpu.matmul %118, %119, %cst_34 {dimension_numbers = #tpu.dot_dimension_numbers<[1], [0], [0], [1], [0, 0, 1, 1], [], []>} : vector<8x16xbf16>, vector<16x64xbf16>, vector<8x64xf32> -> vector<8x64xf32>
    %121 = arith.addf %94, %120 : vector<8x64xf32>
    %122 = vector.extract_strided_slice %117 {offsets = [8, 0], sizes = [8, 16], strides = [1, 1]} : vector<16x16xbf16> to vector<8x16xbf16>
    %123 = vector.extract_strided_slice %25 {offsets = [16, 0], sizes = [16, 64], strides = [1, 1]} : vector<64x64xbf16> to vector<16x64xbf16>
    %cst_35 = arith.constant dense<0.000000e+00> : vector<8x64xf32>
    %124 = tpu.matmul %122, %123, %cst_35 {dimension_numbers = #tpu.dot_dimension_numbers<[1], [0], [0], [1], [0, 0, 1, 1], [], []>} : vector<8x16xbf16>, vector<16x64xbf16>, vector<8x64xf32> -> vector<8x64xf32>
    %125 = arith.addf %121, %124 : vector<8x64xf32>
    %126 = vector.extract_strided_slice %92 {offsets = [0, 32], sizes = [8, 16], strides = [1, 1]} : vector<8x96xf32> to vector<8x16xf32>
    %127 = vector.extract_strided_slice %92 {offsets = [0, 48], sizes = [8, 16], strides = [1, 1]} : vector<8x96xf32> to vector<8x16xf32>
    %128 = tpu.concatenate %126, %127 in 0 : vector<8x16xf32>, vector<8x16xf32> -> vector<16x16xf32>
    %129 = arith.truncf %128 : vector<16x16xf32> to vector<16x16xbf16>
    %130 = vector.extract_strided_slice %92 {offsets = [0, 80], sizes = [8, 16], strides = [1, 1]} : vector<8x96xf32> to vector<8x16xf32>
    %131 = arith.truncf %130 : vector<8x16xf32> to vector<8x16xbf16>
    %132 = vector.extract_strided_slice %93 {offsets = [0, 16], sizes = [8, 16], strides = [1, 1]} : vector<8x32xf32> to vector<8x16xf32>
    %133 = arith.truncf %132 : vector<8x16xf32> to vector<8x16xbf16>
    %cst_36 = arith.constant dense<0.000000e+00> : vector<16x8xf32>
    %134 = tpu.matmul %129, %131, %cst_36 {dimension_numbers = #tpu.dot_dimension_numbers<[1], [1], [0], [0], [0, 0, 1, 0], [], []>} : vector<16x16xbf16>, vector<8x16xbf16>, vector<16x8xf32> -> vector<16x8xf32>
    %135 = arith.addf %134, %26 : vector<16x8xf32>
    %cst_37 = arith.constant dense<0xFF800000> : vector<16xf32>
    %136 = vector.multi_reduction <maximumf>, %135, %cst_37 [1] : vector<16x8xf32> to vector<16xf32>
    %137 = vector.shape_cast %136 : vector<16xf32> to vector<16x1xf32>
    %138 = vector.broadcast %137 : vector<16x1xf32> to vector<16x8xf32>
    %139 = arith.subf %135, %138 : vector<16x8xf32>
    %140 = math.exp %139 : vector<16x8xf32>
    %cst_38 = arith.constant dense<0.000000e+00> : vector<16xf32>
    %141 = vector.multi_reduction <add>, %140, %cst_38 [1] : vector<16x8xf32> to vector<16xf32>
    %142 = vector.shape_cast %141 : vector<16xf32> to vector<16x1xf32>
    %143 = arith.truncf %140 : vector<16x8xf32> to vector<16x8xbf16>
    %cst_39 = arith.constant dense<0.000000e+00> : vector<16x16xf32>
    %144 = tpu.matmul %143, %133, %cst_39 {dimension_numbers = #tpu.dot_dimension_numbers<[1], [0], [0], [1], [0, 0, 1, 1], [], []>} : vector<16x8xbf16>, vector<8x16xbf16>, vector<16x16xf32> -> vector<16x16xf32>
    %145 = tpu.reciprocal %142 {approx = true} : vector<16x1xf32> -> vector<16x1xf32>
    %146 = vector.broadcast %145 : vector<16x1xf32> to vector<16x16xf32>
    %147 = arith.mulf %144, %146 : vector<16x16xf32>
    %148 = arith.truncf %147 : vector<16x16xf32> to vector<16x16xbf16>
    %149 = vector.extract_strided_slice %148 {offsets = [0, 0], sizes = [8, 16], strides = [1, 1]} : vector<16x16xbf16> to vector<8x16xbf16>
    %150 = vector.extract_strided_slice %25 {offsets = [32, 0], sizes = [16, 64], strides = [1, 1]} : vector<64x64xbf16> to vector<16x64xbf16>
    %cst_40 = arith.constant dense<0.000000e+00> : vector<8x64xf32>
    %151 = tpu.matmul %149, %150, %cst_40 {dimension_numbers = #tpu.dot_dimension_numbers<[1], [0], [0], [1], [0, 0, 1, 1], [], []>} : vector<8x16xbf16>, vector<16x64xbf16>, vector<8x64xf32> -> vector<8x64xf32>
    %152 = arith.addf %125, %151 : vector<8x64xf32>
    %153 = vector.extract_strided_slice %148 {offsets = [8, 0], sizes = [8, 16], strides = [1, 1]} : vector<16x16xbf16> to vector<8x16xbf16>
    %154 = vector.extract_strided_slice %25 {offsets = [48, 0], sizes = [16, 64], strides = [1, 1]} : vector<64x64xbf16> to vector<16x64xbf16>
    %cst_41 = arith.constant dense<0.000000e+00> : vector<8x64xf32>
    %155 = tpu.matmul %153, %154, %cst_41 {dimension_numbers = #tpu.dot_dimension_numbers<[1], [0], [0], [1], [0, 0, 1, 1], [], []>} : vector<8x16xbf16>, vector<16x64xbf16>, vector<8x64xf32> -> vector<8x64xf32>
    %156 = arith.addf %152, %155 : vector<8x64xf32>
    %157 = tpu.concatenate %91, %156 in 0 : vector<8x64xf32>, vector<8x64xf32> -> vector<16x64xf32>
    %158 = arith.addf %0, %157 : vector<16x64xf32>
    %159 = arith.mulf %158, %158 : vector<16x64xf32>
    %cst_42 = arith.constant dense<0.000000e+00> : vector<16xf32>
    %160 = vector.multi_reduction <add>, %159, %cst_42 [1] : vector<16x64xf32> to vector<16xf32>
    %161 = vector.shape_cast %160 : vector<16xf32> to vector<16x1xf32>
    %cst_43 = arith.constant 6.400000e+01 : f32
    %162 = vector.broadcast %cst_43 : f32 to vector<16x1xf32>
    %163 = arith.divf %161, %162 : vector<16x1xf32>
    %cst_44 = arith.constant 9.99999974E-6 : f32
    %164 = vector.broadcast %cst_44 : f32 to vector<16x1xf32>
    %165 = arith.addf %163, %164 : vector<16x1xf32>
    %166 = math.rsqrt %165 : vector<16x1xf32>
    %167 = vector.broadcast %166 : vector<16x1xf32> to vector<16x64xf32>
    %168 = arith.mulf %158, %167 : vector<16x64xf32>
    %c0_45 = arith.constant 0 : index
    %c0_46 = arith.constant 0 : index
    %169 = vector.load %arg10[%c0_45, %c0_46] : memref<1x64xf32, #tpu.memory_space<vmem>>, vector<1x64xf32>
    %170 = vector.broadcast %169 : vector<1x64xf32> to vector<16x64xf32>
    %171 = arith.mulf %168, %170 : vector<16x64xf32>
    %172 = arith.truncf %171 : vector<16x64xf32> to vector<16x64xbf16>
    %c0_47 = arith.constant 0 : index
    %c0_48 = arith.constant 0 : index
    %173 = vector.load %arg7[%c0_47, %c0_48] : memref<64x256xbf16, #tpu.memory_space<vmem>>, vector<64x256xbf16>
    %cst_49 = arith.constant dense<0.000000e+00> : vector<16x256xf32>
    %174 = tpu.matmul %172, %173, %cst_49 {dimension_numbers = #tpu.dot_dimension_numbers<[1], [0], [0], [1], [0, 0, 1, 1], [], []>} : vector<16x64xbf16>, vector<64x256xbf16>, vector<16x256xf32> -> vector<16x256xf32>
    %175 = vector.extract_strided_slice %174 {offsets = [0, 0], sizes = [16, 128], strides = [1, 1]} : vector<16x256xf32> to vector<16x128xf32>
    %176 = vector.extract_strided_slice %174 {offsets = [0, 128], sizes = [16, 128], strides = [1, 1]} : vector<16x256xf32> to vector<16x128xf32>
    %177 = arith.negf %175 : vector<16x128xf32>
    %178 = math.exp %177 : vector<16x128xf32>
    %cst_50 = arith.constant 1.000000e+00 : f32
    %179 = vector.broadcast %cst_50 : f32 to vector<16x128xf32>
    %180 = arith.addf %179, %178 : vector<16x128xf32>
    %181 = arith.divf %179, %180 : vector<16x128xf32>
    %182 = arith.mulf %175, %181 : vector<16x128xf32>
    %183 = arith.mulf %182, %176 : vector<16x128xf32>
    %184 = arith.truncf %183 : vector<16x128xf32> to vector<16x128xbf16>
    %c0_51 = arith.constant 0 : index
    %c0_52 = arith.constant 0 : index
    %185 = vector.load %arg8[%c0_51, %c0_52] : memref<128x64xbf16, #tpu.memory_space<vmem>>, vector<128x64xbf16>
    %cst_53 = arith.constant dense<0.000000e+00> : vector<16x64xf32>
    %186 = tpu.matmul %184, %185, %cst_53 {dimension_numbers = #tpu.dot_dimension_numbers<[1], [0], [0], [1], [0, 0, 1, 1], [], []>} : vector<16x128xbf16>, vector<128x64xbf16>, vector<16x64xf32> -> vector<16x64xf32>
    %187 = arith.addf %158, %186 : vector<16x64xf32>
    %c0_54 = arith.constant 0 : index
    %c0_55 = arith.constant 0 : index
    %188 = vector.load %arg11[%c0_54, %c0_55] : memref<16x64xf32, #tpu.memory_space<vmem>>, vector<16x64xf32>
    tpu.vector_store %arg11[%c0_54, %c0_55], %187 {strides = array<i32>} : memref<16x64xf32, #tpu.memory_space<vmem>>, vector<16x64xf32>,
    return
  }
  func.func @transform_0(%arg0: i32) -> (i32, i32) {
    %c0_i32 = arith.constant 0 : i32
    %c0_i32_0 = arith.constant 0 : i32
    return %arg0, %c0_i32 : i32, i32
  }
  func.func @transform_1(%arg0: i32) -> (i32, i32) {
    %c0_i32 = arith.constant 0 : i32
    %c0_i32_0 = arith.constant 0 : i32
    %c0_i32_1 = arith.constant 0 : i32
    return %c0_i32, %c0_i32_0 : i32, i32
  }
  func.func @transform_2(%arg0: i32) -> (i32, i32) {
    %c0_i32 = arith.constant 0 : i32
    %c0_i32_0 = arith.constant 0 : i32
    %c0_i32_1 = arith.constant 0 : i32
    return %c0_i32, %c0_i32_0 : i32, i32
  }
  func.func @transform_3(%arg0: i32) -> (i32, i32) {
    %c0_i32 = arith.constant 0 : i32
    %c0_i32_0 = arith.constant 0 : i32
    %c0_i32_1 = arith.constant 0 : i32
    return %c0_i32, %c0_i32_0 : i32, i32
  }
  func.func @transform_4(%arg0: i32) -> (i32, i32) {
    %c0_i32 = arith.constant 0 : i32
    %c0_i32_0 = arith.constant 0 : i32
    %c0_i32_1 = arith.constant 0 : i32
    return %c0_i32, %c0_i32_0 : i32, i32
  }
  func.func @transform_5(%arg0: i32) -> (i32, i32) {
    %c0_i32 = arith.constant 0 : i32
    %c0_i32_0 = arith.constant 0 : i32
    %c0_i32_1 = arith.constant 0 : i32
    return %c0_i32, %c0_i32_0 : i32, i32
  }
  func.func @transform_6(%arg0: i32) -> (i32, i32) {
    %c0_i32 = arith.constant 0 : i32
    %c0_i32_0 = arith.constant 0 : i32
    %c0_i32_1 = arith.constant 0 : i32
    return %c0_i32, %c0_i32_0 : i32, i32
  }
  func.func @transform_7(%arg0: i32) -> (i32, i32) {
    %c0_i32 = arith.constant 0 : i32
    %c0_i32_0 = arith.constant 0 : i32
    %c0_i32_1 = arith.constant 0 : i32
    return %c0_i32, %c0_i32_0 : i32, i32
  }
  func.func @transform_8(%arg0: i32) -> (i32, i32) {
    %c0_i32 = arith.constant 0 : i32
    %c0_i32_0 = arith.constant 0 : i32
    %c0_i32_1 = arith.constant 0 : i32
    return %c0_i32, %c0_i32_0 : i32, i32
  }
  func.func @transform_9(%arg0: i32) -> (i32, i32) {
    %c0_i32 = arith.constant 0 : i32
    %c0_i32_0 = arith.constant 0 : i32
    %c0_i32_1 = arith.constant 0 : i32
    return %c0_i32, %c0_i32_0 : i32, i32
  }
  func.func @transform_10(%arg0: i32) -> (i32, i32) {
    %c0_i32 = arith.constant 0 : i32
    %c0_i32_0 = arith.constant 0 : i32
    return %arg0, %c0_i32 : i32, i32
  }
}

</mosaic_0001>

<bundles_post_ra>
// kernel: tpu_custom_call.1
= control target key start
LH: loop header
LB: loop body
LE: loop exit
PB: predicated region body
PF: predicated region fallthrough
CT: control target
= control target key end

     0   :  { %15 = vsyncpa [#allocation3], 0  ;;  %s2269_s0 = inlined_call_operand.hbm [shape: f32[16,64], index: 0, kind: input, shape index: {}]   ;;  %s2270_s1 = inlined_call_operand.vmem [shape: f32[16,8], index: 1, kind: input, shape index: {}]   ;;  %s2271_s2 = inlined_call_operand.hbm [shape: f32[16,96], index: 2, kind: input, shape index: {}]   ;;  %s2272_s3 = inlined_call_operand.hbm [shape: f32[16,96], index: 3, kind: input, shape index: {}]   ;;  %s2273_s4 = inlined_call_operand.vmem [shape: bf16[64,224], index: 4, kind: input, shape index: {}]   ;;  %s2274_s5 = inlined_call_operand.hbm [shape: bf16[64,64], index: 5, kind: input, shape index: {}]   ;;  %s2275_s6 = inlined_call_operand.vmem [shape: bf16[64,256], index: 6, kind: input, shape index: {}]   ;;  %s2276_s7 = inlined_call_operand.vmem [shape: bf16[128,64], index: 7, kind: input, shape index: {}]   ;;  %s2277_s8 = inlined_call_operand.vmem [shape: f32[1,64], index: 8, kind: input, shape index: {}]   ;;  %s2278_s9 = inlined_call_operand.vmem [shape: f32[1,64], index: 9, kind: input, shape index: {}]   ;;  %s2279_s10 = inlined_call_operand.hbm [shape: f32[16,64], index: 10, kind: output, shape index: {}]  }
   0x1   :  { %16 = vsyncpa [#allocation6], 0 }
   0x2   :  { %17 = vsyncpa [#allocation9], 0 }
   0x3   :  { %18 = vsyncpa [#allocation4], 0  ;;  %s1824_s13 = smov [#allocation5]   ;;  %s1825_s15 = smov [#allocation2]  }
   0x4   :  { %s38_s14 = sshll.u32 %s1824_s13, 4  ;;  %s24_s16 = sshll.u32 %s1825_s15, 4  ;;  %s39_s14 = int_to_ptr.vmem [resolvable:$true] %s38_s14  ;;  %s1896_s16 = int_to_ptr.vmem [resolvable:$true] %s24_s16 }
   0x5   :  { %s1706_s19 = scalar_lea.hbm %s2271_s2, 256 }
   0x6   :  { %p1707_p0 = scmp.ne.s32.totalorder %s2271_s2, %s1706_s19  ;;  %p1710_p1 = scmp.lt.u32.totalorder %s1706_s19, %s2271_s2 }
   0x8   :  { %p1712_p2 = pnand %p1710_p1, %p1707_p0 }
   0xa   :  { %1715 = shalt.err (!%p1712_p2)
}
   0xb   :  { %s1716_s24 = scalar_lea.vmem %s39_s14, 256  ;;  %p1721_p4 = scmp.lt.s32.totalorder %s39_s14, %s39_s14 }
   0xc   :  { %p1717_p3 = scmp.ne.s32.totalorder %s39_s14, %s1716_s24  ;;  %p1722_p5 = scmp.lt.s32.totalorder %s1716_s24, %s1716_s24 }
   0xe   :  { %p1723_p6 = por %p1722_p5, %p1721_p4 }
  0x10   :  { %p1724_p7 = pnand %p1723_p6, %p1717_p3 }
  0x12   :  { %1727 = shalt.err (!%p1724_p7)
}
  0x13   :  { %s1826_s25 = smov 128   ;;  %s1827_s26 = smov 8  }
  0x14   :  { %44 = dma.hbm_to_vmem [thread:$0]  %s2271_s2, 256, %s39_s14, [#allocation6], %s1826_s25, %s1826_s25, %s1827_s26  }
  0x15   :  { %s1728_s11 = scalar_lea.hbm %s2269_s0, 256 }
  0x16   :  { %p1729_p8 = scmp.ne.s32.totalorder %s2269_s0, %s1728_s11  ;;  %p1732_p9 = scmp.lt.u32.totalorder %s1728_s11, %s2269_s0 }
  0x18   :  { %p1734_p10 = pnand %p1732_p9, %p1729_p8 }
  0x1a   :  { %1737 = shalt.err (!%p1734_p10)
}
  0x1b   :  { %s1738_s18 = scalar_lea.vmem %s1896_s16, 256  ;;  %p1743_p12 = scmp.lt.s32.totalorder %s1896_s16, %s1896_s16 }
  0x1c   :  { %p1739_p11 = scmp.ne.s32.totalorder %s1896_s16, %s1738_s18  ;;  %p1744_p13 = scmp.lt.s32.totalorder %s1738_s18, %s1738_s18 }
  0x1e   :  { %p1745_p0 = por %p1744_p13, %p1743_p12 }
  0x20   :  { %p1746_p1 = pnand %p1745_p0, %p1739_p11 }
  0x22   :  { %1749 = shalt.err (!%p1746_p1)
}
  0x23   :  { %30 = dma.hbm_to_vmem [thread:$0]  %s2269_s0, 256, %s1896_s16, [#allocation3], %s1826_s25, %s1826_s25, %s1827_s26  }
  0x24   :  { %s1828_s19 = smov [#allocation7]   ;;  %s1829_s21 = smov [#allocation8]  }
  0x25   :  { %s50_s20 = sshll.u32 %s1828_s19, 4  ;;  %s64_s22 = sshll.u32 %s1829_s21, 4  ;;  %s51_s20 = int_to_ptr.vmem [resolvable:$true] %s50_s20  ;;  %s1933_s22 = int_to_ptr.vmem [resolvable:$true] %s64_s22 }
  0x26   :  { %s1750_s27 = scalar_lea.hbm %s2272_s3, 256 }
  0x27   :  { %p1751_p2 = scmp.ne.s32.totalorder %s2272_s3, %s1750_s27  ;;  %p1754_p3 = scmp.lt.u32.totalorder %s1750_s27, %s2272_s3 }
  0x29   :  { %p1756_p4 = pnand %p1754_p3, %p1751_p2 }
  0x2b   :  { %1759 = shalt.err (!%p1756_p4)
}
  0x2c   :  { %s1760_s0 = scalar_lea.vmem %s51_s20, 256  ;;  %p1765_p6 = scmp.lt.s32.totalorder %s51_s20, %s51_s20 }
  0x2d   :  { %p1761_p5 = scmp.ne.s32.totalorder %s51_s20, %s1760_s0  ;;  %p1766_p7 = scmp.lt.s32.totalorder %s1760_s0, %s1760_s0 }
  0x2f   :  { %p1767_p8 = por %p1766_p7, %p1765_p6 }
  0x31   :  { %p1768_p9 = pnand %p1767_p8, %p1761_p5 }
  0x33   :  { %1771 = shalt.err (!%p1768_p9)
}
  0x34   :  { %56 = dma.hbm_to_vmem [thread:$0]  %s2272_s3, 256, %s51_s20, [#allocation6], %s1826_s25, %s1826_s25, %s1827_s26  }
  0x35   :  { %s1772_s17 = scalar_lea.hbm %s2274_s5, 512 }
  0x36   :  { %p1773_p10 = scmp.ne.s32.totalorder %s2274_s5, %s1772_s17  ;;  %p1776_p11 = scmp.lt.u32.totalorder %s1772_s17, %s2274_s5 }
  0x38   :  { %p1778_p12 = pnand %p1776_p11, %p1773_p10 }
  0x3a   :  { %1781 = shalt.err (!%p1778_p12)
}
  0x3b   :  { %s1782_s21 = scalar_lea.vmem %s1933_s22, 512  ;;  %p1787_p0 = scmp.lt.s32.totalorder %s1933_s22, %s1933_s22 }
  0x3c   :  { %p1783_p13 = scmp.ne.s32.totalorder %s1933_s22, %s1782_s21  ;;  %p1788_p1 = scmp.lt.s32.totalorder %s1782_s21, %s1782_s21 }
  0x3e   :  { %p1789_p2 = por %p1788_p1, %p1787_p0 }
  0x40   :  { %p1790_p3 = pnand %p1789_p2, %p1783_p13 }
  0x42   :  { %1793 = shalt.err (!%p1790_p3)
}
  0x43   :  { %s1830_s3 = smov 64   ;;  %s1831_s20 = smov 4  }
  0x44   :  { %70 = dma.hbm_to_vmem [thread:$0]  %s2274_s5, 512, %s1933_s22, [#allocation9], %s1830_s3, %s1830_s3, %s1831_s20  }
  0x45   :  { %1816 = dma.done.wait [#allocation3], 256  }
  0x46   :  { %1817 = vsyncadd [#allocation3], 4294967040 }
  0x47   :  { %1818 = dma.done.wait [#allocation6], 512  }
  0x48   :  { %1819 = vsyncadd [#allocation6], 4294966784 }
  0x49   :  { %1820 = dma.done.wait [#allocation9], 512  }
  0x4a   :  { %1821 = vsyncadd [#allocation9], 4294966784  ;;  %v1969_v0 = vld [vmem:[#allocation2] sm:$0xff]  ;;  %vm96_vm0 = vcmask 523264   ;;  %v1971_v1 = vld [vmem:[#allocation2 + $0x8] sm:$0xff]  ;;  %v1832_v11 = vmov 0  }
  0x4b   :  { %v94_v2 = vmul.f32 %v1969_v0, %v1969_v0  ;;  %v95_v3 = vmul.f32 %v1971_v1, %v1971_v1  ;;  %v1622_v6 = vld [vmem:[%s2273_s4 + $0x4] ss:$8 sps:$4 sm:$0xff]   ;;  %v1624_v7 = vld [vmem:[%s2273_s4] ss:$8 sps:$4 sm:$0xff]   ;;  %v1625_v8 = vld [vmem:[%s2273_s4 + $0x14] ss:$8 sps:$4 sm:$0xff]   ;;  %205 = vmatprep.mubr.bf16.mxu0 %v1832_v11 }
  0x4c   :  { %173 = vmatprep.subr.bf16.mxu0 %v1622_v6  ;;  %v1627_v9 = vld [vmem:[%s2273_s4 + $0x10] ss:$8 sps:$4 sm:$0xff]   ;;  %v1628_v10 = vld [vmem:[%s2273_s4 + $0x24] ss:$8 sps:$4 sm:$0xff]   ;;  %v1630_v12 = vld [vmem:[%s2273_s4 + $0x20] ss:$8 sps:$4 sm:$0xff]  }
  0x4d   :  { %v97_v4 = vsel %vm96_vm0, %v94_v2, 0.0  ;;  %v100_v5 = vsel %vm96_vm0, %v95_v3, 0.0  ;;  %174 = vmatpush1.bf16.msra.mxu0 %v1624_v7  ;;  %v1631_v13 = vld [vmem:[%s2273_s4 + $0x34] ss:$8 sps:$4 sm:$0xff]   ;;  %v1633_v14 = vld [vmem:[%s2273_s4 + $0x30] ss:$8 sps:$4 sm:$0xff]  }
  0x4e   :  { %98 = vadd.xlane.f32.xlu0 %v97_v4  ;;  %175 = vmatprep.subr.bf16.mxu0 %v1625_v8  ;;  %v1398_v24 = vld [vmem:[%s2277_s8] ss:$0 sm:$0xff]  ;;  %v1833_v29 = vmov 0.0   ;;  %v216_v30 = vld [vmem:[#allocation5] sm:$0xff]  ;;  %v217_v33 = vld [vmem:[#allocation5 + $0x8] sm:$0xff]  ;;  %vm1834_vm1 = vmmov 0  }
  0x4f   :  { %1495 = vmatprep.subr.bf16.mxu1 %v1833_v29  ;;  %v220_v31 = vld [vmem:[#allocation7] sm:$0xff]  ;;  %1497 = vmatprep.mubr.msk.bf16.mxu1 %vm1834_vm1, %v1833_v29  ;;  %v221_v36 = vld [vmem:[#allocation7 + $0x8] sm:$0xff]  ;;  %s1835_s4 = smov 112   ;;  %vm246_vm2 = vcmask 130048   ;;  %vm294_vm3 = vcmask 64512   ;;  %s1836_s5 = smov 32  }
  0x50   :  { %v2031_v49 = vld [vmem:[%s2270_s1] sm:$0xff]  ;;  %v2036_v51 = vld [vmem:[%s2270_s1 + $0x8] sm:$0xff]  ;;  %vm320_vm4 = vcmask 1043456   ;;  %s1837_s1 = smov 48   ;;  %s1838_s22 = smov 96  }
  0x51   :  { %176 = vmatpush1.bf16.msra.mxu0 %v1627_v9  ;;  %s1839_s27 = smov 16  }
  0x52   :  { %101 = vadd.xlane.f32.xlu0 %v100_v5  ;;  %177 = vmatprep.subr.bf16.mxu0 %v1628_v10 }
  0x55   :  { %178 = vmatpush1.bf16.msra.mxu0 %v1630_v12  ;;  %v2055_v12 = vld [vmem:[#allocation8 + $0x8] sm:$0xff]  }
  0x56   :  { %179 = vmatprep.subr.bf16.mxu0 %v1631_v13  ;;  %v2059_v13 = vld [vmem:[#allocation8] sm:$0xff]  }
  0x59   :  { %180 = vmatpush1.bf16.msra.mxu0 %v1633_v14 }
  0x5a   :  { %1489 = vmatprep.subr.bf16.mxu0 %v1833_v29 }
  0xdb   :  { %v99_v15 = vpop.xlane.xlu0 %98 }
  0xdc   :  { %v104_v16 = vmul.f32 0.015625, %v99_v15 }
  0xde   :  { %v106_v17 = vadd.f32 1e-05, %v104_v16 }
  0xdf   :  { %v102_v18 = vpop.xlane.xlu0 %101 }
  0xe0   :  { %1658 = vrsqrt.f32 %v106_v17  ;;  %v105_v19 = vmul.f32 0.015625, %v102_v18 }
  0xe2   :  { %v107_v20 = vadd.f32 1e-05, %v105_v19 }
  0xe4   :  { %1660 = vrsqrt.f32 %v107_v20 }
  0xea   :  { %v1659_v21 = vpop.eup %1658 }
  0xeb   :  { %v110_v22 = vmul.f32 %v1659_v21, %v1969_v0 }
  0xed   :  { %v119_v26 = vmul.f32 %v1398_v24, %v110_v22 }
  0xee   :  { %v1661_v23 = vpop.eup %1660 }
  0xef   :  { %v111_v25 = vmul.f32 %v1661_v23, %v1971_v1 }
  0xf1   :  { %v120_v27 = vmul.f32 %v1398_v24, %v111_v25 }
  0xf3   :  { %v121_v28 = vpack.c.bf16 %v120_v27, %v119_v26 }
  0xf5   :  { %1407 = vmatmul.mubr.msk.bf16.vlgmr.msra.gmra.mrb[0].mxu0 %vm96_vm0, %v121_v28 }
  0xf6   :  { %1491 = vmatprep.mubr.msk.bf16.mxu0 %vm1834_vm1, %v1833_v29 }
 0x1c8   :  { %v207_v32 = vpop.f32.mrb[0].mxu0 }
 0x1c9   :  { %v218_v34 = vmul.f32 %v216_v30, %v207_v32  ;;  %v209_v35 = vpop.f32.mrb[1].mxu0  ;;  %v2042_v59 = vpack.c.bf16 %v207_v32, %v207_v32 }
 0x1ca   :  { %v222_v37 = vmul.f32 %v220_v31, %v209_v35  ;;  %v2016_v38 = vpop.f32.mrb[2].mxu0 }
 0x1cb   :  { %v219_v39 = vmul.f32 %v217_v33, %v2016_v38  ;;  %v213_v40 = vpop.f32.mrb[3].mxu0 }
 0x1cc   :  { %v224_v41 = vadd.f32 %v222_v37, %v218_v34  ;;  %v223_v42 = vmul.f32 %v221_v36, %v213_v40 }
 0x1ce   :  { %v2019_v43 = vadd.f32 %v223_v42, %v219_v39  ;;  %v241_v44 = vpack.c.bf16 %v224_v41, %v224_v41 }
 0x1d0   :  { %244 = vrot.lane.b32.xlu1 %v241_v44, %s1830_s3 }
 0x1d4   :  { %237 = vrot.lane.b32.xlu1 %v224_v41, %s1835_s4 }
 0x242   :  { %v245_v45 = vpop.permute.xlu1 %244 }
 0x243   :  { %v251_v46 = vsel %vm246_vm2, %v245_v45, 0 }
 0x244   :  { %1490 = vmatpush3.bf16.xpose.msra.mxu0 %v251_v46 }
 0x245   :  { %1501 = vmatprep.subr.bf16.mxu0 %v1833_v29 }
 0x246   :  { %v238_v47 = vpop.permute.xlu1 %237 }
 0x247   :  { %v240_v48 = vpack.c.bf16 %v238_v47, %v224_v41 }
 0x24b   :  { %1492 = vmatmul.mubr.msk.bf16.vlgmr.msra.gmra.mrb[4].mxu0 %vm246_vm2, %v240_v48 }
 0x24c   :  { %1503 = vmatprep.mubr.msk.bf16.mxu0 %vm1834_vm1, %v1833_v29  ;;  %1502 = vmatpush3.bf16.msra.mxu0 %v2055_v12 }
 0x24d   :  { %1513 = vmatprep.subr.bf16.mxu0 %v1833_v29 }
 0x31e   :  { %v287_v50 = vpop.f32.mrb[4].mxu0 }
 0x31f   :  { %v288_v52 = vadd.f32 %v287_v50, %v2031_v49  ;;  %v1493_v53 = vpop.f32.mrb[5].mxu0 }
 0x320   :  { %v290_v54 = vpop.f32.mrb[6].mxu0 }
 0x321   :  { %v291_v55 = vadd.f32 %v290_v54, %v2036_v51  ;;  %v1494_v56 = vpop.f32.mrb[7].mxu0  ;;  %v295_v57 = vsel %vm294_vm3, %v288_v52, -inf }
 0x322   :  { %296 = vmax.xlane.f32.xlu0 %v295_v57 }
 0x323   :  { %v298_v58 = vsel %vm294_vm3, %v291_v55, -inf }
 0x324   :  { %299 = vmax.xlane.f32.xlu1 %v298_v58 }
 0x338   :  { %315 = vrot.lane.b32.xlu0 %v2042_v59, %s1836_s5 }
 0x3af   :  { %v297_v60 = vpop.xlane.xlu0 %296 }
 0x3b0   :  { %v301_v61 = vsub.f32 %v288_v52, %v297_v60 }
 0x3b1   :  { %v300_v62 = vpop.xlane.xlu1 %299 }
 0x3b2   :  { %v303_v63 = vmul.f32 1.442695, %v301_v61  ;;  %v302_v2 = vsub.f32 %v291_v55, %v300_v62 }
 0x3b3   :  { %v316_v3 = vpop.permute.xlu0 %315 }
 0x3b4   :  { %1662 = vpow2.f32 %v303_v63  ;;  %v305_v4 = vmul.f32 1.442695, %v302_v2  ;;  %v322_v5 = vsel %vm320_vm4, %v316_v3, 0  ;;  %v2091_v2 = vpack.c.bf16 %v2019_v43, %v2019_v43  ;;  %v2095_v3 = vld [vmem:[#allocation8 + $0x10] sm:$0xff]  }
 0x3b5   :  { %1496 = vmatpush3.bf16.msra.mxu1 %v322_v5 }
 0x3b6   :  { %1664 = vpow2.f32 %v305_v4  ;;  %1507 = vmatprep.subr.bf16.mxu1 %v1833_v29  ;;  %v2101_v4 = vld [vmem:[#allocation8 + $0x18] sm:$0xff]  }
 0x3be   :  { %v1663_v6 = vpop.eup %1662 }
 0x3bf   :  { %v307_v7 = vsel %vm294_vm3, %v1663_v6, 0.0 }
 0x3c0   :  { %v1665_v8 = vpop.eup %1664  ;;  %308 = vadd.xlane.f32.xlu0 %v307_v7 }
 0x3c1   :  { %v310_v9 = vsel %vm294_vm3, %v1665_v8, 0.0  ;;  %v313_v10 = vpack.c.bf16 %v1665_v8, %v1663_v6 }
 0x3c2   :  { %311 = vadd.xlane.f32.xlu1 %v310_v9 }
 0x3c3   :  { %1498 = vmatmul.mubr.msk.bf16.vlgmr.msra.gmra.mrb[0].mxu1 %vm294_vm3, %v313_v10 }
 0x3c4   :  { %1509 = vmatprep.mubr.msk.bf16.mxu1 %vm1834_vm1, %v1833_v29  ;;  %1508 = vmatpush3.bf16.msra.mxu1 %v2059_v13 }
 0x3c5   :  { %1519 = vmatprep.subr.bf16.mxu1 %v1833_v29 }
 0x3d3   :  { %473 = vrot.lane.b32.xlu1 %v241_v44, %s1837_s1 }
 0x3d6   :  { %471 = vrot.lane.b32.xlu0 %v240_v48, %s1838_s22 }
 0x44d   :  { %v309_v14 = vpop.xlane.xlu0 %308 }
 0x44e   :  { %1666 = vrcp.f32 %v309_v14 }
 0x44f   :  { %v312_v15 = vpop.xlane.xlu1 %311 }
 0x450   :  { %1668 = vrcp.f32 %v312_v15 }
 0x451   :  { %v472_v28 = vpop.permute.xlu0 %471 }
 0x453   :  { %v474_v25 = vpop.permute.xlu1 %473 }
 0x454   :  { %v479_v27 = vsel %vm246_vm2, %v474_v25, 0 }
 0x458   :  { %v1667_v17 = vpop.eup %1666 }
 0x45a   :  { %v1669_v19 = vpop.eup %1668 }
 0x496   :  { %v358_v16 = vpop.f32.mrb[0].mxu1 }
 0x497   :  { %v1499_v18 = vpop.f32.mrb[1].mxu1  ;;  %v367_v21 = vmul.f32 %v1667_v17, %v358_v16 }
 0x498   :  { %v361_v20 = vpop.f32.mrb[2].mxu1 }
 0x499   :  { %v368_v22 = vmul.f32 %v1669_v19, %v361_v20  ;;  %v1500_v23 = vpop.f32.mrb[3].mxu1 }
 0x49b   :  { %v369_v24 = vpack.c.bf16 %v368_v22, %v367_v21 }
 0x49d   :  { %v371_v26 = vrot.slane %v369_v24, 4  ;;  %1510 = vmatmul.mubr.msk.bf16.vlgmr.msra.gmra.mrb[4].mxu1 %vm246_vm2, %v369_v24 }
 0x49e   :  { %1521 = vmatprep.mubr.msk.bf16.mxu1 %vm1834_vm1, %v1833_v29 }
 0x49f   :  { %1504 = vmatmul.mubr.msk.bf16.vlgmr.msra.gmra.mrb[8].mxu0 %vm246_vm2, %v371_v26 }
 0x4a0   :  { %1514 = vmatpush3.bf16.xpose.msra.mxu0 %v479_v27  ;;  %1515 = vmatprep.mubr.msk.bf16.mxu0 %vm1834_vm1, %v1833_v29 }
 0x4a1   :  { %1525 = vmatprep.subr.bf16.mxu0 %v1833_v29 }
 0x4a7   :  { %1516 = vmatmul.mubr.msk.bf16.vlgmr.msra.gmra.mrb[12].mxu0 %vm246_vm2, %v472_v28 }
 0x4a8   :  { %1527 = vmatprep.mubr.msk.bf16.mxu0 %vm1834_vm1, %v1833_v29  ;;  %1526 = vmatpush3.bf16.msra.mxu0 %v2095_v3 }
 0x4a9   :  { %1537 = vmatprep.subr.bf16.mxu0 %v1833_v29 }
 0x570   :  { %v464_v30 = vpop.f32.mrb[4].mxu1 }
 0x571   :  { %v1511_v31 = vpop.f32.mrb[5].mxu1 }
 0x572   :  { %v415_v32 = vpop.f32.mrb[8].mxu0  ;;  %v467_v33 = vpop.f32.mrb[6].mxu1 }
 0x573   :  { %v2074_v34 = vadd.f32 %v464_v30, %v415_v32  ;;  %v1505_v35 = vpop.f32.mrb[9].mxu0  ;;  %v1512_v36 = vpop.f32.mrb[7].mxu1 }
 0x574   :  { %v418_v37 = vpop.f32.mrb[10].mxu0 }
 0x575   :  { %v1506_v39 = vpop.f32.mrb[11].mxu0 }
 0x57a   :  { %v515_v40 = vpop.f32.mrb[12].mxu0 }
 0x57b   :  { %v516_v41 = vadd.f32 %v515_v40, %v2031_v49  ;;  %v1517_v42 = vpop.f32.mrb[13].mxu0 }
 0x57c   :  { %v518_v44 = vpop.f32.mrb[14].mxu0  ;;  %v2128_v42 = vpack.c.bf16 %v2016_v38, %v2016_v38 }
 0x57d   :  { %v519_v45 = vadd.f32 %v518_v44, %v2036_v51  ;;  %v1518_v46 = vpop.f32.mrb[15].mxu0  ;;  %v522_v47 = vsel %vm294_vm3, %v516_v41, -inf }
 0x57e   :  { %523 = vmax.xlane.f32.xlu1 %v522_v47 }
 0x57f   :  { %v525_v48 = vsel %vm294_vm3, %v519_v45, -inf }
 0x580   :  { %526 = vmax.xlane.f32.xlu0 %v525_v48 }
 0x58f   :  { %541 = vrot.lane.b32.xlu1 %v2042_v59, %s1839_s27 }
 0x60b   :  { %v524_v50 = vpop.xlane.xlu1 %523 }
 0x60c   :  { %v528_v52 = vsub.f32 %v516_v41, %v524_v50 }
 0x60d   :  { %v527_v53 = vpop.xlane.xlu0 %526 }
 0x60e   :  { %v530_v54 = vmul.f32 1.442695, %v528_v52  ;;  %v529_v55 = vsub.f32 %v519_v45, %v527_v53 }
 0x60f   :  { %v542_v56 = vpop.permute.xlu1 %541 }
 0x610   :  { %1670 = vpow2.f32 %v530_v54  ;;  %v532_v57 = vmul.f32 1.442695, %v529_v55  ;;  %v547_v58 = vsel %vm320_vm4, %v542_v56, 0 }
 0x611   :  { %1520 = vmatpush3.bf16.msra.mxu1 %v547_v58 }
 0x612   :  { %1672 = vpow2.f32 %v532_v57  ;;  %1531 = vmatprep.subr.bf16.mxu1 %v1833_v29 }
 0x61a   :  { %v1671_v60 = vpop.eup %1670 }
 0x61b   :  { %v534_v61 = vsel %vm294_vm3, %v1671_v60, 0.0 }
 0x61c   :  { %v1673_v62 = vpop.eup %1672  ;;  %535 = vadd.xlane.f32.xlu0 %v534_v61 }
 0x61d   :  { %v537_v59 = vsel %vm294_vm3, %v1673_v62, 0.0  ;;  %v540_v63 = vpack.c.bf16 %v1673_v62, %v1671_v60 }
 0x61e   :  { %538 = vadd.xlane.f32.xlu1 %v537_v59 }
 0x61f   :  { %1522 = vmatmul.mubr.msk.bf16.vlgmr.msra.gmra.mrb[8].mxu1 %vm294_vm3, %v540_v63 }
 0x620   :  { %1533 = vmatprep.mubr.msk.bf16.mxu1 %vm1834_vm1, %v1833_v29  ;;  %1532 = vmatpush3.bf16.msra.mxu1 %v2101_v4 }
 0x621   :  { %1543 = vmatprep.subr.bf16.mxu1 %v1833_v29 }
 0x632   :  { %705 = vrot.lane.b32.xlu0 %v2091_v2, %s1830_s3 }
 0x636   :  { %698 = vrot.lane.b32.xlu0 %v2019_v43, %s1835_s4 }
 0x6a9   :  { %v536_v5 = vpop.xlane.xlu0 %535 }
 0x6aa   :  { %1674 = vrcp.f32 %v536_v5 }
 0x6ab   :  { %v539_v6 = vpop.xlane.xlu1 %538 }
 0x6ac   :  { %1676 = vrcp.f32 %v539_v6 }
 0x6ad   :  { %v706_v18 = vpop.permute.xlu0 %705 }
 0x6ae   :  { %v711_v20 = vsel %vm246_vm2, %v706_v18, 0 }
 0x6b1   :  { %v699_v22 = vpop.permute.xlu0 %698 }
 0x6b2   :  { %v701_v23 = vpack.c.bf16 %v699_v22, %v2019_v43 }
 0x6b4   :  { %v1675_v8 = vpop.eup %1674 }
 0x6b6   :  { %v1677_v10 = vpop.eup %1676 }
 0x6f2   :  { %v583_v7 = vpop.f32.mrb[8].mxu1 }
 0x6f3   :  { %v1523_v9 = vpop.f32.mrb[9].mxu1  ;;  %v592_v15 = vmul.f32 %v1675_v8, %v583_v7 }
 0x6f4   :  { %v586_v14 = vpop.f32.mrb[10].mxu1 }
 0x6f5   :  { %v593_v16 = vmul.f32 %v1677_v10, %v586_v14  ;;  %v1524_v17 = vpop.f32.mrb[11].mxu1 }
 0x6f7   :  { %v594_v19 = vpack.c.bf16 %v593_v16, %v592_v15 }
 0x6f9   :  { %v646_v21 = vrot.slane %v594_v19, 4  ;;  %1528 = vmatmul.mubr.msk.bf16.vlgmr.msra.gmra.mrb[16].mxu0 %vm246_vm2, %v594_v19 }
 0x6fa   :  { %1538 = vmatpush3.bf16.xpose.msra.mxu0 %v711_v20  ;;  %1539 = vmatprep.mubr.msk.bf16.mxu0 %vm1834_vm1, %v1833_v29 }
 0x6fb   :  { %1534 = vmatmul.mubr.msk.bf16.vlgmr.msra.gmra.mrb[12].mxu1 %vm246_vm2, %v646_v21  ;;  %1549 = vmatprep.subr.bf16.mxu0 %v1833_v29 }
 0x6fc   :  { %1545 = vmatprep.mubr.msk.bf16.mxu1 %vm1834_vm1, %v1833_v29 }
 0x701   :  { %1540 = vmatmul.mubr.msk.bf16.vlgmr.msra.gmra.mrb[20].mxu0 %vm246_vm2, %v701_v23 }
 0x702   :  { %1550 = vmatpush3.bf16.msra.mxu0 %v2055_v12  ;;  %1551 = vmatprep.mubr.msk.bf16.mxu0 %vm1834_vm1, %v1833_v29 }
 0x703   :  { %1561 = vmatprep.subr.bf16.mxu0 %v1833_v29 }
 0x7cc   :  { %v638_v24 = vpop.f32.mrb[16].mxu0 }
 0x7cd   :  { %v644_v25 = vadd.f32 %v638_v24, %v2074_v34  ;;  %v1529_v26 = vpop.f32.mrb[17].mxu0 }
 0x7ce   :  { %v641_v27 = vpop.f32.mrb[18].mxu0  ;;  %v690_v28 = vpop.f32.mrb[12].mxu1 }
 0x7cf   :  { %v2120_v30 = vadd.f32 %v690_v28, %v644_v25  ;;  %v1530_v31 = vpop.f32.mrb[19].mxu0  ;;  %v1535_v32 = vpop.f32.mrb[13].mxu1 }
 0x7d0   :  { %v693_v43 = vpop.f32.mrb[14].mxu1 }
 0x7d1   :  { %v1536_v33 = vpop.f32.mrb[15].mxu1 }
 0x7d4   :  { %v747_v35 = vpop.f32.mrb[20].mxu0 }
 0x7d5   :  { %v748_v12 = vadd.f32 %v747_v35, %v2031_v49  ;;  %v1541_v36 = vpop.f32.mrb[21].mxu0 }
 0x7d6   :  { %v750_v37 = vpop.f32.mrb[22].mxu0 }
 0x7d7   :  { %v751_v39 = vadd.f32 %v750_v37, %v2036_v51  ;;  %v1542_v40 = vpop.f32.mrb[23].mxu0  ;;  %v754_v41 = vsel %vm294_vm3, %v748_v12, -inf }
 0x7d8   :  { %755 = vmax.xlane.f32.xlu0 %v754_v41 }
 0x7d9   :  { %v757_v34 = vsel %vm294_vm3, %v751_v39, -inf }
 0x7da   :  { %758 = vmax.xlane.f32.xlu1 %v757_v34 }
 0x7eb   :  { %774 = vrot.lane.b32.xlu1 %v2128_v42, %s1836_s5 }
 0x865   :  { %v756_v44 = vpop.xlane.xlu0 %755 }
 0x866   :  { %v760_v45 = vsub.f32 %v748_v12, %v756_v44 }
 0x867   :  { %v759_v46 = vpop.xlane.xlu1 %758 }
 0x868   :  { %v762_v47 = vmul.f32 1.442695, %v760_v45  ;;  %v761_v48 = vsub.f32 %v751_v39, %v759_v46  ;;  %v2166_v39 = vadd.f32 %v2120_v30, %v1969_v0 }
 0x86a   :  { %1678 = vpow2.f32 %v762_v47  ;;  %v764_v50 = vmul.f32 1.442695, %v761_v48  ;;  %v1133_v45 = vmul.f32 %v2166_v39, %v2166_v39 }
 0x86b   :  { %v775_v52 = vpop.permute.xlu1 %774 }
 0x86c   :  { %1680 = vpow2.f32 %v764_v50  ;;  %v780_v53 = vsel %vm320_vm4, %v775_v52, 0  ;;  %v1135_v0 = vsel %vm96_vm0, %v1133_v45, 0.0 }
 0x86d   :  { %1544 = vmatpush3.bf16.msra.mxu1 %v780_v53 }
 0x86e   :  { %1555 = vmatprep.subr.bf16.mxu1 %v1833_v29 }
 0x874   :  { %v1679_v54 = vpop.eup %1678 }
 0x875   :  { %v766_v38 = vsel %vm294_vm3, %v1679_v54, 0.0 }
 0x876   :  { %v1681_v55 = vpop.eup %1680  ;;  %767 = vadd.xlane.f32.xlu1 %v766_v38 }
 0x877   :  { %v769_v56 = vsel %vm294_vm3, %v1681_v55, 0.0  ;;  %v772_v57 = vpack.c.bf16 %v1681_v55, %v1679_v54 }
 0x878   :  { %770 = vadd.xlane.f32.xlu0 %v769_v56 }
 0x879   :  { %1546 = vmatmul.mubr.msk.bf16.vlgmr.msra.gmra.mrb[16].mxu1 %vm294_vm3, %v772_v57 }
 0x87a   :  { %1556 = vmatpush3.bf16.msra.mxu1 %v2059_v13  ;;  %1557 = vmatprep.mubr.msk.bf16.mxu1 %vm1834_vm1, %v1833_v29 }
 0x87b   :  { %1567 = vmatprep.subr.bf16.mxu1 %v1833_v29 }
 0x88e   :  { %919 = vrot.lane.b32.xlu0 %v2091_v2, %s1837_s1 }
 0x892   :  { %917 = vrot.lane.b32.xlu0 %v701_v23, %s1838_s22 }
 0x903   :  { %v768_v58 = vpop.xlane.xlu1 %767 }
 0x904   :  { %1682 = vrcp.f32 %v768_v58 }
 0x905   :  { %v771_v60 = vpop.xlane.xlu0 %770 }
 0x906   :  { %1684 = vrcp.f32 %v771_v60 }
 0x909   :  { %v920_v9 = vpop.permute.xlu0 %919 }
 0x90a   :  { %v925_v2 = vsel %vm246_vm2, %v920_v9, 0  ;;  %v1640_v9 = vld [vmem:[%s2275_s6 + $0x4] ss:$8 sps:$4 sm:$0xff]  }
 0x90d   :  { %v918_v14 = vpop.permute.xlu0 %917 }
 0x90e   :  { %v1683_v62 = vpop.eup %1682 }
 0x910   :  { %v1685_v63 = vpop.eup %1684 }
 0x94c   :  { %v816_v61 = vpop.f32.mrb[16].mxu1 }
 0x94d   :  { %v1547_v59 = vpop.f32.mrb[17].mxu1  ;;  %v825_v13 = vmul.f32 %v1683_v62, %v816_v61 }
 0x94e   :  { %v819_v5 = vpop.f32.mrb[18].mxu1 }
 0x94f   :  { %v826_v6 = vmul.f32 %v1685_v63, %v819_v5  ;;  %v1548_v7 = vpop.f32.mrb[19].mxu1 }
 0x951   :  { %v827_v8 = vpack.c.bf16 %v826_v6, %v825_v13 }
 0x953   :  { %v829_v10 = vrot.slane %v827_v8, 4  ;;  %1558 = vmatmul.mubr.msk.bf16.vlgmr.msra.gmra.mrb[20].mxu1 %vm246_vm2, %v827_v8 }
 0x954   :  { %1569 = vmatprep.mubr.msk.bf16.mxu1 %vm1834_vm1, %v1833_v29 }
 0x955   :  { %1552 = vmatmul.mubr.msk.bf16.vlgmr.msra.gmra.mrb[24].mxu0 %vm246_vm2, %v829_v10  ;;  %v1638_v10 = vld [vmem:[%s2275_s6] ss:$8 sps:$4 sm:$0xff]  }
 0x956   :  { %1562 = vmatpush3.bf16.xpose.msra.mxu0 %v925_v2  ;;  %1563 = vmatprep.mubr.msk.bf16.mxu0 %vm1834_vm1, %v1833_v29  ;;  %v1641_v2 = vld [vmem:[%s2275_s6 + $0x10] ss:$8 sps:$4 sm:$0xff]  }
 0x957   :  { %1573 = vmatprep.subr.bf16.mxu0 %v1833_v29 }
 0x95d   :  { %1564 = vmatmul.mubr.msk.bf16.vlgmr.msra.gmra.mrb[28].mxu0 %vm246_vm2, %v918_v14  ;;  %v1646_v14 = vld [vmem:[%s2275_s6 + $0x24] ss:$8 sps:$4 sm:$0xff]  }
 0x95e   :  { %1574 = vmatpush3.bf16.msra.mxu0 %v2095_v3  ;;  %1575 = vmatprep.mubr.msk.bf16.mxu0 %vm1834_vm1, %v1833_v29 }
 0x95f   :  { %1210 = vmatprep.subr.bf16.mxu0 %v1640_v9 }
 0xa26   :  { %v910_v15 = vpop.f32.mrb[20].mxu1 }
 0xa27   :  { %v1559_v16 = vpop.f32.mrb[21].mxu1 }
 0xa28   :  { %v867_v17 = vpop.f32.mrb[24].mxu0  ;;  %v913_v18 = vpop.f32.mrb[22].mxu1  ;;  %v1649_v16 = vld [vmem:[%s2275_s6 + $0x34] ss:$8 sps:$4 sm:$0xff]  }
 0xa29   :  { %v911_v19 = vadd.f32 %v910_v15, %v867_v17  ;;  %v1553_v20 = vpop.f32.mrb[25].mxu0  ;;  %v1560_v21 = vpop.f32.mrb[23].mxu1  ;;  %v1644_v15 = vld [vmem:[%s2275_s6 + $0x20] ss:$8 sps:$4 sm:$0xff]   ;;  %v1647_v17 = vld [vmem:[%s2275_s6 + $0x30] ss:$8 sps:$4 sm:$0xff]  }
 0xa2a   :  { %v870_v22 = vpop.f32.mrb[26].mxu0 }
 0xa2b   :  { %v1554_v23 = vpop.f32.mrb[27].mxu0 }
 0xa30   :  { %v961_v24 = vpop.f32.mrb[28].mxu0 }
 0xa31   :  { %v962_v25 = vadd.f32 %v961_v24, %v2031_v49  ;;  %v1565_v26 = vpop.f32.mrb[29].mxu0 }
 0xa32   :  { %v964_v27 = vpop.f32.mrb[30].mxu0 }
 0xa33   :  { %v965_v28 = vadd.f32 %v964_v27, %v2036_v51  ;;  %v1566_v3 = vpop.f32.mrb[31].mxu0  ;;  %v968_v31 = vsel %vm294_vm3, %v962_v25, -inf  ;;  %v1428_v27 = vld [vmem:[%s2278_s9] ss:$0 sm:$0xff] }
 0xa34   :  { %969 = vmax.xlane.f32.xlu0 %v968_v31 }
 0xa35   :  { %v971_v32 = vsel %vm294_vm3, %v965_v28, -inf }
 0xa36   :  { %972 = vmax.xlane.f32.xlu1 %v971_v32 }
 0xa47   :  { %987 = vrot.lane.b32.xlu1 %v2128_v42, %s1839_s27 }
 0xac1   :  { %v970_v43 = vpop.xlane.xlu0 %969 }
 0xac2   :  { %v974_v33 = vsub.f32 %v962_v25, %v970_v43  ;;  %v1650_v43 = vld [vmem:[%s2276_s7] sm:$0xff]  }
 0xac3   :  { %v973_v35 = vpop.xlane.xlu1 %972 }
 0xac4   :  { %v976_v12 = vmul.f32 1.442695, %v974_v33  ;;  %v975_v36 = vsub.f32 %v965_v28, %v973_v35  ;;  %v1651_v33 = vld [vmem:[%s2276_s7 + $0x8] sm:$0xff]   ;;  %v1652_v35 = vld [vmem:[%s2276_s7 + $0x10] sm:$0xff]  }
 0xac6   :  { %1686 = vpow2.f32 %v976_v12  ;;  %v978_v49 = vmul.f32 1.442695, %v975_v36  ;;  %v1653_v12 = vld [vmem:[%s2276_s7 + $0x18] sm:$0xff]   ;;  %v1654_v36 = vld [vmem:[%s2276_s7 + $0x20] sm:$0xff]  }
 0xac7   :  { %v988_v37 = vpop.permute.xlu1 %987 }
 0xac8   :  { %1688 = vpow2.f32 %v978_v49  ;;  %v993_v51 = vsel %vm320_vm4, %v988_v37, 0  ;;  %v1655_v49 = vld [vmem:[%s2276_s7 + $0x28] sm:$0xff]   ;;  %v1656_v37 = vld [vmem:[%s2276_s7 + $0x30] sm:$0xff]  }
 0xac9   :  { %1568 = vmatpush3.bf16.msra.mxu1 %v993_v51  ;;  %v1657_v51 = vld [vmem:[%s2276_s7 + $0x38] sm:$0xff]   ;;  %s1840_s7 = smov [#allocation10]  }
 0xaca   :  { %1579 = vmatprep.subr.bf16.mxu1 %v1833_v29  ;;  %s1384_s12 = sshll.u32 %s1840_s7, 4  ;;  %s1385_s12 = int_to_ptr.vmem [resolvable:$true] %s1384_s12 }
 0xacb   :  { %s1794_s13 = scalar_lea.vmem %s1385_s12, 256  ;;  %p1799_p5 = scmp.lt.s32.totalorder %s1385_s12, %s1385_s12 }
 0xacc   :  { %p1795_p4 = scmp.ne.s32.totalorder %s1385_s12, %s1794_s13  ;;  %p1800_p6 = scmp.lt.s32.totalorder %s1794_s13, %s1794_s13 }
 0xace   :  { %p1801_p7 = por %p1800_p6, %p1799_p5 }
 0xad0   :  { %v1687_v40 = vpop.eup %1686  ;;  %p1802_p8 = pnand %p1801_p7, %p1795_p4 }
 0xad1   :  { %v980_v41 = vsel %vm294_vm3, %v1687_v40, 0.0 }
 0xad2   :  { %v1689_v34 = vpop.eup %1688  ;;  %981 = vadd.xlane.f32.xlu1 %v980_v41 }
 0xad3   :  { %v983_v42 = vsel %vm294_vm3, %v1689_v34, 0.0  ;;  %v986_v44 = vpack.c.bf16 %v1689_v34, %v1687_v40 }
 0xad4   :  { %984 = vadd.xlane.f32.xlu0 %v983_v42 }
 0xad5   :  { %1570 = vmatmul.mubr.msk.bf16.vlgmr.msra.gmra.mrb[24].mxu1 %vm294_vm3, %v986_v44 }
 0xad6   :  { %1580 = vmatpush3.bf16.msra.mxu1 %v2101_v4  ;;  %1581 = vmatprep.mubr.msk.bf16.mxu1 %vm1834_vm1, %v1833_v29 }
 0xad7   :  { %1585 = vmatprep.subr.bf16.mxu1 %v1833_v29 }
 0xad8   :  { %1136 = vadd.xlane.f32.xlu0 %v1135_v0 }
 0xb5f   :  { %v982_v30 = vpop.xlane.xlu1 %981 }
 0xb60   :  { %1690 = vrcp.f32 %v982_v30 }
 0xb61   :  { %v985_v46 = vpop.xlane.xlu0 %984 }
 0xb62   :  { %1692 = vrcp.f32 %v985_v46 }
 0xb65   :  { %v1137_v18 = vpop.xlane.xlu0 %1136 }
 0xb6a   :  { %v1691_v48 = vpop.eup %1690 }
 0xb6c   :  { %v1693_v52 = vpop.eup %1692 }
 0xba8   :  { %v1029_v47 = vpop.f32.mrb[24].mxu1 }
 0xba9   :  { %v1571_v50 = vpop.f32.mrb[25].mxu1  ;;  %v1038_v54 = vmul.f32 %v1691_v48, %v1029_v47 }
 0xbaa   :  { %v1032_v53 = vpop.f32.mrb[26].mxu1 }
 0xbab   :  { %v1039_v38 = vmul.f32 %v1693_v52, %v1032_v53  ;;  %v1572_v4 = vpop.f32.mrb[27].mxu1 }
 0xbad   :  { %v1040_v55 = vpack.c.bf16 %v1039_v38, %v1038_v54 }
 0xbaf   :  { %v1086_v56 = vrot.slane %v1040_v55, 4  ;;  %1576 = vmatmul.mubr.msk.bf16.vlgmr.msra.gmra.mrb[32].mxu0 %vm246_vm2, %v1040_v55 }
 0xbb0   :  { %1242 = vmatprep.mubr.bf16.mxu0 %v1832_v11  ;;  %1211 = vmatpush1.bf16.msra.mxu0 %v1638_v10 }
 0xbb1   :  { %1582 = vmatmul.mubr.msk.bf16.vlgmr.msra.gmra.mrb[28].mxu1 %vm246_vm2, %v1086_v56 }
 0xbb2   :  { %1601 = vmatprep.mubr.msk.bf16.mxu1 %vm1834_vm1, %v1833_v29  ;;  %1586 = vmatpush3.bf16.msra.mxu1 %v1650_v43 }
 0xbb3   :  { %1587 = vmatprep.subr.bf16.mxu1 %v1833_v29 }
 0xbb6   :  { %1588 = vmatpush3.bf16.msra.mxu1 %v1651_v33 }
 0xbb7   :  { %1589 = vmatprep.subr.bf16.mxu1 %v1833_v29 }
 0xbba   :  { %1590 = vmatpush3.bf16.msra.mxu1 %v1652_v35 }
 0xbbb   :  { %1591 = vmatprep.subr.bf16.mxu1 %v1833_v29 }
 0xbbe   :  { %1592 = vmatpush3.bf16.msra.mxu1 %v1653_v12 }
 0xbbf   :  { %1593 = vmatprep.subr.bf16.mxu1 %v1833_v29 }
 0xbc2   :  { %1594 = vmatpush3.bf16.msra.mxu1 %v1654_v36 }
 0xbc3   :  { %1595 = vmatprep.subr.bf16.mxu1 %v1833_v29 }
 0xbc6   :  { %1596 = vmatpush3.bf16.msra.mxu1 %v1655_v49 }
 0xbc7   :  { %1597 = vmatprep.subr.bf16.mxu1 %v1833_v29 }
 0xbca   :  { %1598 = vmatpush3.bf16.msra.mxu1 %v1656_v37 }
 0xbcb   :  { %1599 = vmatprep.subr.bf16.mxu1 %v1833_v29 }
 0xbce   :  { %1600 = vmatpush3.bf16.msra.mxu1 %v1657_v51 }
 0xc82   :  { %v1078_v57 = vpop.f32.mrb[32].mxu0 }
 0xc83   :  { %v1084_v58 = vadd.f32 %v1078_v57, %v911_v19  ;;  %v1577_v60 = vpop.f32.mrb[33].mxu0  ;;  %v1141_v19 = vmul.f32 0.015625, %v1137_v18 }
 0xc84   :  { %v1081_v61 = vpop.f32.mrb[34].mxu0  ;;  %v1124_v62 = vpop.f32.mrb[28].mxu1 }
 0xc85   :  { %v1130_v59 = vadd.f32 %v1124_v62, %v1084_v58  ;;  %v1578_v63 = vpop.f32.mrb[35].mxu0  ;;  %v1583_v5 = vpop.f32.mrb[29].mxu1  ;;  %v1143_v20 = vadd.f32 1e-05, %v1141_v19 }
 0xc86   :  { %v1127_v13 = vpop.f32.mrb[30].mxu1 }
 0xc87   :  { %v2184_v6 = vadd.f32 %v1130_v59, %v1971_v1  ;;  %v1584_v7 = vpop.f32.mrb[31].mxu1  ;;  %v1643_v1 = vld [vmem:[%s2275_s6 + $0x14] ss:$8 sps:$4 sm:$0xff]   ;;  %1694 = vrsqrt.f32 %v1143_v20 }
 0xc88   :  { %1212 = vmatprep.subr.bf16.mxu0 %v1643_v1 }
 0xc89   :  { %v1134_v11 = vmul.f32 %v2184_v6, %v2184_v6  ;;  %1213 = vmatpush1.bf16.msra.mxu0 %v1641_v2 }
 0xc8a   :  { %1214 = vmatprep.subr.bf16.mxu0 %v1646_v14 }
 0xc8b   :  { %v1138_v8 = vsel %vm96_vm0, %v1134_v11, 0.0 }
 0xc8c   :  { %1139 = vadd.xlane.f32.xlu0 %v1138_v8 }
 0xc8d   :  { %1215 = vmatpush1.bf16.msra.mxu0 %v1644_v15 }
 0xc8e   :  { %1216 = vmatprep.subr.bf16.mxu0 %v1649_v16 }
 0xc91   :  { %1217 = vmatpush1.bf16.msra.mxu0 %v1647_v17  ;;  %v1695_v24 = vpop.eup %1694 }
 0xc92   :  { %v1147_v25 = vmul.f32 %v1695_v24, %v2166_v39 }
 0xc94   :  { %v1156_v31 = vmul.f32 %v1428_v27, %v1147_v25 }
 0xd19   :  { %v1140_v21 = vpop.xlane.xlu0 %1139 }
 0xd1a   :  { %v1142_v22 = vmul.f32 0.015625, %v1140_v21 }
 0xd1c   :  { %v1144_v23 = vadd.f32 1e-05, %v1142_v22 }
 0xd1e   :  { %1696 = vrsqrt.f32 %v1144_v23 }
 0xd28   :  { %v1697_v26 = vpop.eup %1696 }
 0xd29   :  { %v1148_v28 = vmul.f32 %v1697_v26, %v2184_v6 }
 0xd2b   :  { %v1157_v3 = vmul.f32 %v1428_v27, %v1148_v28 }
 0xd2d   :  { %v1158_v32 = vpack.c.bf16 %v1157_v3, %v1156_v31 }
 0xd2f   :  { %1437 = vmatmul.mubr.msk.bf16.vlgmr.msra.gmra.mrb[36].mxu0 %vm96_vm0, %v1158_v32 }
 0xe02   :  { %v1244_v40 = vpop.f32.mrb[36].mxu0 }
 0xe03   :  { %v1438_v41 = vmul.f32 -1.442695, %v1244_v40  ;;  %v1246_v34 = vpop.f32.mrb[37].mxu0 }
 0xe04   :  { %v1248_v42 = vpop.f32.mrb[38].mxu0 }
 0xe05   :  { %1698 = vpow2.f32 %v1438_v41  ;;  %v1439_v44 = vmul.f32 -1.442695, %v1248_v42  ;;  %v1250_v45 = vpop.f32.mrb[39].mxu0 }
 0xe07   :  { %1700 = vpow2.f32 %v1439_v44 }
 0xe0f   :  { %v1699_v0 = vpop.eup %1698 }
 0xe10   :  { %v1259_v30 = vadd.f32 1.0, %v1699_v0 }
 0xe11   :  { %v1701_v46 = vpop.eup %1700 }
 0xe12   :  { %1702 = vrcp.f32 %v1259_v30  ;;  %v1260_v47 = vadd.f32 1.0, %v1701_v46 }
 0xe14   :  { %1704 = vrcp.f32 %v1260_v47 }
 0xe1c   :  { %v1703_v29 = vpop.eup %1702 }
 0xe1d   :  { %v1265_v48 = vmul.f32 %v1703_v29, %v1244_v40 }
 0xe1e   :  { %v1705_v50 = vpop.eup %1704 }
 0xe1f   :  { %v1267_v52 = vmul.f32 %v1265_v48, %v1246_v34  ;;  %v1266_v53 = vmul.f32 %v1705_v50, %v1248_v42 }
 0xe21   :  { %v1268_v54 = vmul.f32 %v1266_v53, %v1250_v45 }
 0xe23   :  { %v1269_v38 = vpack.c.bf16 %v1268_v54, %v1267_v52 }
 0xe25   :  { %1602 = vmatmul.mubr.bf16.vlgmr.msra.gmra.mrb[32].mxu1 %v1269_v38 }
 0xef8   :  { %v1368_v4 = vpop.f32.mrb[32].mxu1 }
 0xef9   :  { %v1375_v55 = vadd.f32 %v1368_v4, %v2166_v39  ;;  %v1603_v56 = vpop.f32.mrb[33].mxu1 }
 0xefa   :  { %v1371_v57 = vpop.f32.mrb[34].mxu1 }
 0xefb   :  { %1377 = vst.msk [vmem:[#allocation10] sm:$0xff] %vm96_vm0, %v1375_v55  ;;  %v1376_v58 = vadd.f32 %v1371_v57, %v2184_v6  ;;  %v1604_v60 = vpop.f32.mrb[35].mxu1 }
 0xefd   :  { %1378 = vst.msk [vmem:[#allocation10 + $0x8] sm:$0xff] %vm96_vm0, %v1376_v58 }
 0xefe   :  { %1805 = shalt.err (!%p1802_p8)
}
 0xeff   :  { %s1806_s18 = scalar_lea.hbm %s2279_s10, 256 }
 0xf00   :  { %p1807_p9 = scmp.ne.s32.totalorder %s2279_s10, %s1806_s18  ;;  %p1810_p10 = scmp.lt.u32.totalorder %s1806_s18, %s2279_s10 }
 0xf02   :  { %p1812_p11 = pnand %p1810_p10, %p1807_p9 }
 0xf04   :  { %1815 = shalt.err (!%p1812_p11)
}
 0xf05   :  { %1390 = dma.vmem_to_hbm [thread:$0]  %s1385_s12, 256, %s2279_s10, [#allocation4], %s1826_s25, %s1826_s25, %s1827_s26  }
 0xf06   :  { %1822 = dma.done.wait [#allocation4], 256  }
 0xf07   :  { %1823 = vsyncadd [#allocation4], 4294967040 }
 0xf08   :  { %1394 = vsyncpa [#allocation3], 1 }
 0xf09   :  { %1395 = vsyncpa [#allocation6], 1 }
 0xf0a   :  { %1396 = vsyncpa [#allocation9], 1 }
 0xf0b   :  { %1397 = vsyncpa [#allocation4], 1 }

</bundles_post_ra>
